<compile_context>
chip_gen: v7x
topology: tpu7x:2x2x1
jax: 0.10.0
libtpu: 0.0.40
codegen_flags: <defaults>
</compile_context>

<pallas_src>
import jax
import jax.numpy as jnp
from jax import lax
from jax.experimental import pallas as pl
from jax.experimental.pallas import tpu as pltpu


def _attn_kernel(xq_ref, xk_ref, v_ref, wq_ref, bq_ref, wk_ref, bk_ref,
                 o_ref, q_scr, k_cache, m_scr, l_scr, acc_scr):
    """One (batch b, q-tile qi, kv-tile kv) grid step (flash-style softmax).

    xq_ref : (TQ, H)        hidden_states rows of this query tile
    xk_ref : (TKV, H)       hidden_states rows of this kv tile (used only at qi == 0)
    v_ref  : (TKV, Dv)      value_states rows of this kv tile
    wq_ref : (H, H)         q projection weight, stored (in, out)
    bq_ref : (1, H)         q projection bias
    wk_ref : (H, H)         k projection weight, stored (in, out)
    bk_ref : (1, H)         k projection bias
    o_ref  : (TQ, Dv)       attention output for this query tile (written at last kv)
    q_scr  : (TQ, H)        projected q for this tile (input dtype), set at kv == 0
    k_cache: (NKV, TKV, H)  per-batch projected k, filled during the qi == 0 sweep
    m_scr, l_scr : (TQ, 1)  f32 online-softmax running max / normalizer
    acc_scr: (TQ, Dv)       f32 online-softmax running numerator
    """
    qi = pl.program_id(1)
    kv = pl.program_id(2)
    nkv = pl.num_programs(2)

    # --- q projection + softmax-state init: once per (b, qi), at kv == 0 ---
    @pl.when(kv == 0)
    def _():
        q = jnp.dot(xq_ref[...], wq_ref[...],
                    preferred_element_type=jnp.float32) + bq_ref[...]
        q_scr[...] = q.astype(q_scr.dtype)
        m_scr[...] = jnp.full_like(m_scr, -jnp.inf)
        l_scr[...] = jnp.zeros_like(l_scr)
        acc_scr[...] = jnp.zeros_like(acc_scr)

    # --- k projection: once per (batch, kv tile), during the qi == 0 sweep.
    #     The cached tiles persist in VMEM for every later query tile of this
    #     batch element, so the k projection runs exactly once per batch. ---
    @pl.when(qi == 0)
    def _():
        k = jnp.dot(xk_ref[...], wk_ref[...],
                    preferred_element_type=jnp.float32) + bk_ref[...]
        k_cache[kv] = k.astype(k_cache.dtype)

    k_tile = k_cache[kv]                                            # (TKV, H)

    # scores = q @ k^T, expressed as a last-dim contraction so Mosaic feeds the
    # MXU directly (no transposed copy of k). Operands stay in the input dtype
    # (bf16 inputs hit the bf16 MXU path); accumulation is always f32.
    s = lax.dot_general(q_scr[...], k_tile, (((1,), (1,)), ((), ())),
                        preferred_element_type=jnp.float32)        # (TQ, TKV)

    # Online (numerically stable) softmax update in f32. Matches the reference
    # module: no 1/sqrt(d) score scaling, no causal mask in forward().
    m_prev = m_scr[...]
    m_new = jnp.maximum(m_prev, jnp.max(s, axis=-1, keepdims=True))
    alpha = jnp.exp(m_prev - m_new)
    p = jnp.exp(s - m_new)
    l_scr[...] = alpha * l_scr[...] + jnp.sum(p, axis=-1, keepdims=True)
    acc_scr[...] = alpha * acc_scr[...] + jnp.dot(
        p.astype(v_ref.dtype), v_ref[...], preferred_element_type=jnp.float32)
    m_scr[...] = m_new
    # TODO(synk): attention_dropout on the softmax weights is identity in eval
    # mode and is not applied here.

    # --- finalize: normalize and store this query tile's output ---
    @pl.when(kv == nkv - 1)
    def _():
        inv_l = pl.reciprocal(l_scr[...], approx=True)   # EUP slot, ~free
        o_ref[...] = (acc_scr[...] * inv_l).astype(o_ref.dtype)


def custom_attention(hidden_states, value_states, wq, bq, wk, bk, *,
                     tq=128, tkv=128):
    """Pallas implementation of CustomAttention.forward (output_attentions=False).

    hidden_states: (B, L, H)
    value_states : (B, L, Dv), Dv must be a multiple of H
    wq, wk       : (H, H) stored as (in, out)
    bq, bk       : (H,)
    tq, tkv      : query / key-value tile sizes (multiples of 128 preferred).
    Returns attn_output of shape (B, L, Dv // H, H).
    """
    B, L, H = hidden_states.shape
    Dv = value_states.shape[-1]
    assert Dv % H == 0, "value feature dim must be a multiple of hidden_size"

    tq = min(tq, L)
    tkv = min(tkv, L)
    assert L % tq == 0 and L % tkv == 0, "tile sizes must divide the sequence length"
    nq, nkv = L // tq, L // tkv

    # Biases as (1, H) rows (cheap reshape; no per-call weight concat anymore).
    bq2 = bq.reshape(1, H)
    bk2 = bk.reshape(1, H)

    # hidden_states is passed twice with two views: (tq, H) rows for this query
    # tile's q projection and (tkv, H) rows for the (cached) k projection.
    # After the qi == 0 sweep the k view's block index is pinned to 0 so Pallas
    # stops re-fetching it on later query tiles.
    xk_index = lambda b, qi, kv: (b, jnp.where(qi == 0, kv, 0), 0)

    out = pl.pallas_call(
        _attn_kernel,
        out_shape=jax.ShapeDtypeStruct((B, L, Dv), hidden_states.dtype),
        grid_spec=pltpu.PrefetchScalarGridSpec(
            num_scalar_prefetch=0,
            grid=(B, nq, nkv),
            in_specs=[
                pl.BlockSpec((None, tq, H), lambda b, qi, kv: (b, qi, 0)),   # x (q rows)
                pl.BlockSpec((None, tkv, H), xk_index),                      # x (k rows)
                pl.BlockSpec((None, tkv, Dv), lambda b, qi, kv: (b, kv, 0)), # value_states
                pl.BlockSpec((H, H), lambda b, qi, kv: (0, 0)),              # Wq
                pl.BlockSpec((1, H), lambda b, qi, kv: (0, 0)),              # bq
                pl.BlockSpec((H, H), lambda b, qi, kv: (0, 0)),              # Wk
                pl.BlockSpec((1, H), lambda b, qi, kv: (0, 0)),              # bk
            ],
            out_specs=pl.BlockSpec((None, tq, Dv), lambda b, qi, kv: (b, qi, 0)),
            scratch_shapes=[
                pltpu.VMEM((tq, H), hidden_states.dtype),         # q tile
                pltpu.VMEM((nkv, tkv, H), hidden_states.dtype),   # per-batch k cache
                pltpu.VMEM((tq, 1), jnp.float32),                 # m (running max)
                pltpu.VMEM((tq, 1), jnp.float32),                 # l (normalizer)
                pltpu.VMEM((tq, Dv), jnp.float32),                # acc (numerator)
            ],
        ),
        compiler_params=pltpu.CompilerParams(
            # Batch axis is independent -> megacore-shardable (2 TCs on v7x).
            # qi/kv must stay sequential: the per-batch k cache and the online
            # softmax state persist across those axes.
            dimension_semantics=("parallel", "arbitrary", "arbitrary"),
            # VMEM now scales with (tq, tkv) blocks (+ the (L, H) k cache), so
            # the default scoped-VMEM limit is sufficient on v5e/v6e/v7x.
        ),
    )(hidden_states, hidden_states, value_states, wq, bq2, wk, bk2)

    # attn_output.view(bsz, q_len, -1, hidden_size)
    return out.reshape(B, L, Dv // H, H)


def _reference(hidden_states, value_states, wq, bq, wk, bk):
    q = hidden_states @ wq + bq
    k = hidden_states @ wk + bk
    s = jnp.einsum("bqh,bkh->bqk", q, k)
    p = jax.nn.softmax(s.astype(jnp.float32), axis=-1).astype(q.dtype)
    o = jnp.einsum("bqk,bkd->bqd", p, value_states)
    B, L, H = hidden_states.shape
    return o.reshape(B, L, -1, H)


if __name__ == "__main__":
    # Small but TPU-friendly shapes: lane-dense Dv (=128) output, and L (=256)
    # large enough to exercise both the query-tiled (nq = 2) and kv-tiled
    # (nkv = 2) code paths, including the per-batch k-cache reuse.
    B, L, H = 2, 256, 64
    Dv = 2 * H  # value feature dim; a multiple of hidden_size

    key = jax.random.PRNGKey(0)
    k1, k2, k3, k4, k5, k6 = jax.random.split(key, 6)

    hidden_states = jax.random.normal(k1, (B, L, H), dtype=jnp.float32)
    value_states = jax.random.normal(k2, (B, L, Dv), dtype=jnp.float32)

    # Deterministic parameter init (q_proj / k_proj: Linear(H, H, bias=True)),
    # weights already in (in, out) layout.
    wq = jax.random.normal(k3, (H, H), dtype=jnp.float32) * 0.05
    bq = jax.random.normal(k4, (H,), dtype=jnp.float32) * 0.05
    wk = jax.random.normal(k5, (H, H), dtype=jnp.float32) * 0.05
    bk = jax.random.normal(k6, (H,), dtype=jnp.float32) * 0.05

    attn_out = custom_attention(hidden_states, value_states, wq, bq, wk, bk,
                                tq=128, tkv=128)
    attn_out = jax.block_until_ready(attn_out)

    ref = _reference(hidden_states, value_states, wq, bq, wk, bk)
    assert attn_out.shape == (B, L, Dv // H, H)
    # approx=True (EUP) reciprocal in the softmax normalizer plus the online-
    # softmax rescaling bound accuracy, so tolerance is looser than pure f32.
    assert jnp.allclose(attn_out, ref, atol=2e-3, rtol=2e-3), (
        float(jnp.max(jnp.abs(attn_out - ref))))

    print("KERNEL_OK")
</pallas_src>

<mosaic_0001>
module attributes {stable_mosaic.version = 11 : i64} {
  func.func @_attn_kernel(%arg0: i32, %arg1: i32, %arg2: i32, %arg3: memref<1x128x64xf32, #tpu.memory_space<vmem>>, %arg4: memref<1x128x64xf32, #tpu.memory_space<vmem>>, %arg5: memref<1x128x128xf32, #tpu.memory_space<vmem>>, %arg6: memref<64x64xf32, #tpu.memory_space<vmem>>, %arg7: memref<1x64xf32, #tpu.memory_space<vmem>>, %arg8: memref<64x64xf32, #tpu.memory_space<vmem>>, %arg9: memref<1x64xf32, #tpu.memory_space<vmem>>, %arg10: memref<1x128x128xf32, #tpu.memory_space<vmem>>, %arg11: memref<128x64xf32, #tpu.memory_space<vmem>>, %arg12: memref<2x128x64xf32, #tpu.memory_space<vmem>>, %arg13: memref<128x1xf32, #tpu.memory_space<vmem>>, %arg14: memref<128x1xf32, #tpu.memory_space<vmem>>, %arg15: memref<128x128xf32, #tpu.memory_space<vmem>>) attributes {dimension_semantics = [#tpu.dimension_semantics<parallel>, #tpu.dimension_semantics<arbitrary>, #tpu.dimension_semantics<arbitrary>], iteration_bounds = array<i64: 2, 2, 2>, scalar_prefetch = 0 : i64, scratch_operands = 5 : i64, tpu.core_type = #tpu.core_type<tc>, window_params = [{transform_indices = @transform_0, window_bounds = array<i64: 1, 128, 64>}, {transform_indices = @transform_1, window_bounds = array<i64: 1, 128, 64>}, {transform_indices = @transform_2, window_bounds = array<i64: 1, 128, 128>}, {pipeline_mode = #tpu.pipeline_mode<synchronous>, transform_indices = @transform_3, window_bounds = array<i64: 64, 64>}, {pipeline_mode = #tpu.pipeline_mode<synchronous>, transform_indices = @transform_4, window_bounds = array<i64: 1, 64>}, {pipeline_mode = #tpu.pipeline_mode<synchronous>, transform_indices = @transform_5, window_bounds = array<i64: 64, 64>}, {pipeline_mode = #tpu.pipeline_mode<synchronous>, transform_indices = @transform_6, window_bounds = array<i64: 1, 64>}, {transform_indices = @transform_7, window_bounds = array<i64: 1, 128, 128>}]} {
    %c0_i32 = arith.constant 0 : i32
    %0 = arith.cmpi eq, %arg2, %c0_i32 : i32
    %1 = arith.extui %0 : i1 to i32
    %c0_i32_0 = arith.constant 0 : i32
    %2 = arith.cmpi ne, %1, %c0_i32_0 : i32
    scf.if %2 {
      %c0_25 = arith.constant 0 : index
      %c0_26 = arith.constant 0 : index
      %c0_27 = arith.constant 0 : index
      %38 = vector.load %arg3[%c0_25, %c0_26, %c0_27] : memref<1x128x64xf32, #tpu.memory_space<vmem>>, vector<1x128x64xf32>
      %39 = vector.shape_cast %38 : vector<1x128x64xf32> to vector<128x64xf32>
      %c0_28 = arith.constant 0 : index
      %c0_29 = arith.constant 0 : index
      %40 = vector.load %arg6[%c0_28, %c0_29] : memref<64x64xf32, #tpu.memory_space<vmem>>, vector<64x64xf32>
      %cst_30 = arith.constant dense<0.000000e+00> : vector<128x64xf32>
      %41 = tpu.matmul %39, %40, %cst_30 {dimension_numbers = #tpu.dot_dimension_numbers<[1], [0], [0], [1], [0, 0, 1, 1], [], []>} : vector<128x64xf32>, vector<64x64xf32>, vector<128x64xf32> -> vector<128x64xf32>
      %c0_31 = arith.constant 0 : index
      %c0_32 = arith.constant 0 : index
      %42 = vector.load %arg7[%c0_31, %c0_32] : memref<1x64xf32, #tpu.memory_space<vmem>>, vector<1x64xf32>
      %43 = vector.broadcast %42 : vector<1x64xf32> to vector<128x64xf32>
      %44 = arith.addf %41, %43 : vector<128x64xf32>
      %c0_33 = arith.constant 0 : index
      %c0_34 = arith.constant 0 : index
      %45 = vector.load %arg11[%c0_33, %c0_34] : memref<128x64xf32, #tpu.memory_space<vmem>>, vector<128x64xf32>
      tpu.vector_store %arg11[%c0_33, %c0_34], %44 {strides = array<i32>} : memref<128x64xf32, #tpu.memory_space<vmem>>, vector<128x64xf32>,
      %cst_35 = arith.constant 0xFF800000 : f32
      %46 = vector.broadcast %cst_35 : f32 to vector<128x1xf32>
      %c0_36 = arith.constant 0 : index
      %c0_37 = arith.constant 0 : index
      %47 = vector.load %arg13[%c0_36, %c0_37] : memref<128x1xf32, #tpu.memory_space<vmem>>, vector<128x1xf32>
      tpu.vector_store %arg13[%c0_36, %c0_37], %46 {strides = array<i32>} : memref<128x1xf32, #tpu.memory_space<vmem>>, vector<128x1xf32>,
      %cst_38 = arith.constant 0.000000e+00 : f32
      %48 = vector.broadcast %cst_38 : f32 to vector<128x1xf32>
      %c0_39 = arith.constant 0 : index
      %c0_40 = arith.constant 0 : index
      %49 = vector.load %arg14[%c0_39, %c0_40] : memref<128x1xf32, #tpu.memory_space<vmem>>, vector<128x1xf32>
      tpu.vector_store %arg14[%c0_39, %c0_40], %48 {strides = array<i32>} : memref<128x1xf32, #tpu.memory_space<vmem>>, vector<128x1xf32>,
      %cst_41 = arith.constant 0.000000e+00 : f32
      %50 = vector.broadcast %cst_41 : f32 to vector<128x128xf32>
      %c0_42 = arith.constant 0 : index
      %c0_43 = arith.constant 0 : index
      %51 = vector.load %arg15[%c0_42, %c0_43] : memref<128x128xf32, #tpu.memory_space<vmem>>, vector<128x128xf32>
      tpu.vector_store %arg15[%c0_42, %c0_43], %50 {strides = array<i32>} : memref<128x128xf32, #tpu.memory_space<vmem>>, vector<128x128xf32>,
    } else {
    }
    %c0_i32_1 = arith.constant 0 : i32
    %3 = arith.cmpi eq, %arg1, %c0_i32_1 : i32
    %4 = arith.extui %3 : i1 to i32
    %c0_i32_2 = arith.constant 0 : i32
    %5 = arith.cmpi ne, %4, %c0_i32_2 : i32
    scf.if %5 {
      %c0_25 = arith.constant 0 : index
      %c0_26 = arith.constant 0 : index
      %c0_27 = arith.constant 0 : index
      %38 = vector.load %arg4[%c0_25, %c0_26, %c0_27] : memref<1x128x64xf32, #tpu.memory_space<vmem>>, vector<1x128x64xf32>
      %39 = vector.shape_cast %38 : vector<1x128x64xf32> to vector<128x64xf32>
      %c0_28 = arith.constant 0 : index
      %c0_29 = arith.constant 0 : index
      %40 = vector.load %arg8[%c0_28, %c0_29] : memref<64x64xf32, #tpu.memory_space<vmem>>, vector<64x64xf32>
      %cst_30 = arith.constant dense<0.000000e+00> : vector<128x64xf32>
      %41 = tpu.matmul %39, %40, %cst_30 {dimension_numbers = #tpu.dot_dimension_numbers<[1], [0], [0], [1], [0, 0, 1, 1], [], []>} : vector<128x64xf32>, vector<64x64xf32>, vector<128x64xf32> -> vector<128x64xf32>
      %c0_31 = arith.constant 0 : index
      %c0_32 = arith.constant 0 : index
      %42 = vector.load %arg9[%c0_31, %c0_32] : memref<1x64xf32, #tpu.memory_space<vmem>>, vector<1x64xf32>
      %43 = vector.broadcast %42 : vector<1x64xf32> to vector<128x64xf32>
      %44 = arith.addf %41, %43 : vector<128x64xf32>
      %45 = arith.index_cast %arg2 : i32 to index
      %c0_33 = arith.constant 0 : index
      %c0_34 = arith.constant 0 : index
      %46 = vector.load %arg12[%45, %c0_33, %c0_34] : memref<2x128x64xf32, #tpu.memory_space<vmem>>, vector<1x128x64xf32>
      %47 = vector.shape_cast %46 : vector<1x128x64xf32> to vector<128x64xf32>
      %48 = vector.shape_cast %44 : vector<128x64xf32> to vector<1x128x64xf32>
      tpu.vector_store %arg12[%45, %c0_33, %c0_34], %48 {strides = array<i32>} : memref<2x128x64xf32, #tpu.memory_space<vmem>>, vector<1x128x64xf32>,
    } else {
    }
    %6 = arith.index_cast %arg2 : i32 to index
    %c0 = arith.constant 0 : index
    %c0_3 = arith.constant 0 : index
    %7 = vector.load %arg12[%6, %c0, %c0_3] : memref<2x128x64xf32, #tpu.memory_space<vmem>>, vector<1x128x64xf32>
    %8 = vector.shape_cast %7 : vector<1x128x64xf32> to vector<128x64xf32>
    %c0_4 = arith.constant 0 : index
    %c0_5 = arith.constant 0 : index
    %9 = vector.load %arg11[%c0_4, %c0_5] : memref<128x64xf32, #tpu.memory_space<vmem>>, vector<128x64xf32>
    %cst = arith.constant dense<0.000000e+00> : vector<128x128xf32>
    %10 = tpu.matmul %9, %8, %cst {dimension_numbers = #tpu.dot_dimension_numbers<[1], [1], [0], [0], [0, 0, 1, 0], [], []>} : vector<128x64xf32>, vector<128x64xf32>, vector<128x128xf32> -> vector<128x128xf32>
    %c0_6 = arith.constant 0 : index
    %c0_7 = arith.constant 0 : index
    %11 = vector.load %arg13[%c0_6, %c0_7] : memref<128x1xf32, #tpu.memory_space<vmem>>, vector<128x1xf32>
    %cst_8 = arith.constant dense<0xFF800000> : vector<128xf32>
    %12 = vector.multi_reduction <maximumf>, %10, %cst_8 [1] : vector<128x128xf32> to vector<128xf32>
    %13 = vector.shape_cast %12 : vector<128xf32> to vector<128x1xf32>
    %14 = arith.maximumf %11, %13 : vector<128x1xf32>
    %15 = arith.subf %11, %14 : vector<128x1xf32>
    %16 = math.exp %15 : vector<128x1xf32>
    %17 = vector.broadcast %14 : vector<128x1xf32> to vector<128x128xf32>
    %18 = arith.subf %10, %17 : vector<128x128xf32>
    %19 = math.exp %18 : vector<128x128xf32>
    %c0_9 = arith.constant 0 : index
    %c0_10 = arith.constant 0 : index
    %20 = vector.load %arg14[%c0_9, %c0_10] : memref<128x1xf32, #tpu.memory_space<vmem>>, vector<128x1xf32>
    %21 = arith.mulf %16, %20 : vector<128x1xf32>
    %cst_11 = arith.constant dense<0.000000e+00> : vector<128xf32>
    %22 = vector.multi_reduction <add>, %19, %cst_11 [1] : vector<128x128xf32> to vector<128xf32>
    %23 = vector.shape_cast %22 : vector<128xf32> to vector<128x1xf32>
    %24 = arith.addf %21, %23 : vector<128x1xf32>
    %c0_12 = arith.constant 0 : index
    %c0_13 = arith.constant 0 : index
    %25 = vector.load %arg14[%c0_12, %c0_13] : memref<128x1xf32, #tpu.memory_space<vmem>>, vector<128x1xf32>
    tpu.vector_store %arg14[%c0_12, %c0_13], %24 {strides = array<i32>} : memref<128x1xf32, #tpu.memory_space<vmem>>, vector<128x1xf32>,
    %c0_14 = arith.constant 0 : index
    %c0_15 = arith.constant 0 : index
    %26 = vector.load %arg15[%c0_14, %c0_15] : memref<128x128xf32, #tpu.memory_space<vmem>>, vector<128x128xf32>
    %27 = vector.broadcast %16 : vector<128x1xf32> to vector<128x128xf32>
    %28 = arith.mulf %27, %26 : vector<128x128xf32>
    %c0_16 = arith.constant 0 : index
    %c0_17 = arith.constant 0 : index
    %c0_18 = arith.constant 0 : index
    %29 = vector.load %arg5[%c0_16, %c0_17, %c0_18] : memref<1x128x128xf32, #tpu.memory_space<vmem>>, vector<1x128x128xf32>
    %30 = vector.shape_cast %29 : vector<1x128x128xf32> to vector<128x128xf32>
    %cst_19 = arith.constant dense<0.000000e+00> : vector<128x128xf32>
    %31 = tpu.matmul %19, %30, %cst_19 {dimension_numbers = #tpu.dot_dimension_numbers<[1], [0], [0], [1], [0, 0, 1, 1], [], []>} : vector<128x128xf32>, vector<128x128xf32>, vector<128x128xf32> -> vector<128x128xf32>
    %32 = arith.addf %28, %31 : vector<128x128xf32>
    %c0_20 = arith.constant 0 : index
    %c0_21 = arith.constant 0 : index
    %33 = vector.load %arg15[%c0_20, %c0_21] : memref<128x128xf32, #tpu.memory_space<vmem>>, vector<128x128xf32>
    tpu.vector_store %arg15[%c0_20, %c0_21], %32 {strides = array<i32>} : memref<128x128xf32, #tpu.memory_space<vmem>>, vector<128x128xf32>,
    %c0_22 = arith.constant 0 : index
    %c0_23 = arith.constant 0 : index
    %34 = vector.load %arg13[%c0_22, %c0_23] : memref<128x1xf32, #tpu.memory_space<vmem>>, vector<128x1xf32>
    tpu.vector_store %arg13[%c0_22, %c0_23], %14 {strides = array<i32>} : memref<128x1xf32, #tpu.memory_space<vmem>>, vector<128x1xf32>,
    %c1_i32 = arith.constant 1 : i32
    %35 = arith.cmpi eq, %arg2, %c1_i32 : i32
    %36 = arith.extui %35 : i1 to i32
    %c0_i32_24 = arith.constant 0 : i32
    %37 = arith.cmpi ne, %36, %c0_i32_24 : i32
    scf.if %37 {
      %c0_25 = arith.constant 0 : index
      %c0_26 = arith.constant 0 : index
      %38 = vector.load %arg14[%c0_25, %c0_26] : memref<128x1xf32, #tpu.memory_space<vmem>>, vector<128x1xf32>
      %39 = tpu.reciprocal %38 {approx = true} : vector<128x1xf32> -> vector<128x1xf32>
      %c0_27 = arith.constant 0 : index
      %c0_28 = arith.constant 0 : index
      %40 = vector.load %arg15[%c0_27, %c0_28] : memref<128x128xf32, #tpu.memory_space<vmem>>, vector<128x128xf32>
      %41 = vector.broadcast %39 : vector<128x1xf32> to vector<128x128xf32>
      %42 = arith.mulf %40, %41 : vector<128x128xf32>
      %c0_29 = arith.constant 0 : index
      %c0_30 = arith.constant 0 : index
      %c0_31 = arith.constant 0 : index
      %43 = vector.load %arg10[%c0_29, %c0_30, %c0_31] : memref<1x128x128xf32, #tpu.memory_space<vmem>>, vector<1x128x128xf32>
      %44 = vector.shape_cast %43 : vector<1x128x128xf32> to vector<128x128xf32>
      %45 = vector.shape_cast %42 : vector<128x128xf32> to vector<1x128x128xf32>
      tpu.vector_store %arg10[%c0_29, %c0_30, %c0_31], %45 {strides = array<i32>} : memref<1x128x128xf32, #tpu.memory_space<vmem>>, vector<1x128x128xf32>,
    } else {
    }
    return
  }
  func.func @transform_0(%arg0: i32, %arg1: i32, %arg2: i32) -> (i32, i32, i32) {
    %c0_i32 = arith.constant 0 : i32
    %c0_i32_0 = arith.constant 0 : i32
    return %arg0, %arg1, %c0_i32 : i32, i32, i32
  }
  func.func @transform_1(%arg0: i32, %arg1: i32, %arg2: i32) -> (i32, i32, i32) {
    %c0_i32 = arith.constant 0 : i32
    %0 = arith.cmpi eq, %arg1, %c0_i32 : i32
    %c0_i32_0 = arith.constant 0 : i32
    %1 = arith.select %0, %arg2, %c0_i32_0 : i32
    %c0_i32_1 = arith.constant 0 : i32
    %c0_i32_2 = arith.constant 0 : i32
    return %arg0, %1, %c0_i32_1 : i32, i32, i32
  }
  func.func @transform_2(%arg0: i32, %arg1: i32, %arg2: i32) -> (i32, i32, i32) {
    %c0_i32 = arith.constant 0 : i32
    %c0_i32_0 = arith.constant 0 : i32
    return %arg0, %arg2, %c0_i32 : i32, i32, i32
  }
  func.func @transform_3(%arg0: i32, %arg1: i32, %arg2: i32) -> (i32, i32) {
    %c0_i32 = arith.constant 0 : i32
    %c0_i32_0 = arith.constant 0 : i32
    %c0_i32_1 = arith.constant 0 : i32
    return %c0_i32, %c0_i32_0 : i32, i32
  }
  func.func @transform_4(%arg0: i32, %arg1: i32, %arg2: i32) -> (i32, i32) {
    %c0_i32 = arith.constant 0 : i32
    %c0_i32_0 = arith.constant 0 : i32
    %c0_i32_1 = arith.constant 0 : i32
    return %c0_i32, %c0_i32_0 : i32, i32
  }
  func.func @transform_5(%arg0: i32, %arg1: i32, %arg2: i32) -> (i32, i32) {
    %c0_i32 = arith.constant 0 : i32
    %c0_i32_0 = arith.constant 0 : i32
    %c0_i32_1 = arith.constant 0 : i32
    return %c0_i32, %c0_i32_0 : i32, i32
  }
  func.func @transform_6(%arg0: i32, %arg1: i32, %arg2: i32) -> (i32, i32) {
    %c0_i32 = arith.constant 0 : i32
    %c0_i32_0 = arith.constant 0 : i32
    %c0_i32_1 = arith.constant 0 : i32
    return %c0_i32, %c0_i32_0 : i32, i32
  }
  func.func @transform_7(%arg0: i32, %arg1: i32, %arg2: i32) -> (i32, i32, i32) {
    %c0_i32 = arith.constant 0 : i32
    %c0_i32_0 = arith.constant 0 : i32
    return %arg0, %arg1, %c0_i32 : i32, i32, i32
  }
}

</mosaic_0001>

<bundles_post_ra>
// kernel: tpu_custom_call.1
= control target key start
LH: loop header
LB: loop body
LE: loop exit
PB: predicated region body
PF: predicated region fallthrough
CT: control target
= control target key end

     0   :  { %s3869_s0 = inlined_call_operand.vmem [shape: f32[2,256,64], index: 0, kind: input, shape index: {}]   ;;  %s3870_s1 = inlined_call_operand.vmem [shape: f32[2,256,64], index: 1, kind: input, shape index: {}]   ;;  %s3871_s2 = inlined_call_operand.vmem [shape: f32[2,256,128], index: 2, kind: input, shape index: {}]   ;;  %s3872_s3 = inlined_call_operand.vmem [shape: f32[64,64], index: 3, kind: input, shape index: {}]   ;;  %s3873_s4 = inlined_call_operand.vmem [shape: f32[1,64], index: 4, kind: input, shape index: {}]   ;;  %s3874_s5 = inlined_call_operand.vmem [shape: f32[64,64], index: 5, kind: input, shape index: {}]   ;;  %s3875_s6 = inlined_call_operand.vmem [shape: f32[1,64], index: 6, kind: input, shape index: {}]   ;;  %s3876_s7 = inlined_call_operand.hbm [shape: f32[2,256,128], index: 7, kind: output, shape index: {}]  }
   0x1   :  { %3889 = sst [smem:[#allocation21_spill]] %s3876_s7 }
   0x2   :  { %12 = vsyncpa [#allocation8], 0 }
   0x3   :  { %14 = vsyncpa [#allocation8 + $0x1], 0  ;;  %s3060_s24 = smov 0   ;;  %s3062_s25 = smov 0  }
   0x4   :  { %s3064_s26 = smov 0   ;;  %s3066_s27 = smov 0  }
   0x5   :  { %s3068_s28 = smov 0   ;;  %s3070_s29 = smov 0  }
   0x6   :  { %s3072_s30 = smov 0   ;;  %s3074_s8 = smov 0  }
   0x7   :  { %s3076_s9 = smov 0   ;;  %s3078_s10 = smov 0  }
   0x8 LB: > { %3890 = sst [smem:[#allocation10_spill]] %s2975_s24  ;;  %s2184_s11 = sadd.s32 4294967295, %s3011_s10   ;;  %s3011_s10 = sphi %s3078_s10, %s20_s10   ;;  %s3007_s9 = sphi %s3076_s9, %s3917_s9   ;;  %s3003_s8 = sphi %s3074_s8, %s3916_s8   ;;  %s2999_s30 = sphi %s3072_s30, %s3915_s30   ;;  %s2995_s29 = sphi %s3070_s29, %s3914_s29   ;;  %s2991_s28 = sphi %s3068_s28, %s3913_s28   ;;  %s2987_s27 = sphi %s3066_s27, %s3912_s27   ;;  %s2983_s26 = sphi %s3064_s26, %s3911_s26   ;;  %s2979_s25 = sphi %s3062_s25, %s3919_s25   ;;  %s2975_s24 = sphi %s3060_s24, %s3918_s24  }
   0x9   : > { %3891 = sst [smem:[#allocation11_spill]] %s2983_s26  ;;  %s2185_s12 = sadd.s32 4294967294, %s3011_s10  }
   0xa   : > { %3892 = sst [smem:[#allocation12_spill]] %s2999_s30  ;;  %s32_s13 = sadd.s32 1, %s2999_s30 }
   0xb   : > { %3893 = sst [smem:[#allocation13_spill]] %s3003_s8  ;;  %p33_p0 = scmp.ge.s32.totalorder %s32_s13, 2 }
   0xc   : > { %3894 = sst [smem:[#allocation14_spill]] %s3007_s9  ;;  %s35_s14 = sadd.s32 1, %s3003_s8 }
   0xd   : > { %3895 = sst [smem:[#allocation15_spill]] %s3011_s10  ;;  %s39_s15 = sadd.s32 1, %s3007_s9 }
   0xe   : > { %p230_p1 = scmp.ne.s32.totalorder %s2983_s26, %s2979_s25  ;;  %s3921_s13 = smov (%p33_p0, %s32_s13), 0 }
   0xf   : > { %3896 = sst [smem:[#allocation16_spill]] %s3921_s13  ;;  %s3923_s14 = smov (!%p33_p0, %s35_s14), %s3003_s8 }
  0x10   : > { %p231_p2 = scmp.eq.s32.totalorder %s2184_s11, 7  ;;  %p236_p3 = scmp.ne.s32.totalorder %s2979_s25, %s2975_s24 }
  0x11   : > { %p37_p4 = scmp.ge.s32.totalorder %s3923_s14, 2  ;;  %p237_p5 = scmp.eq.s32.totalorder %s2185_s12, 7 }
  0x12   : > { %p3122_p6 = por %p231_p2, %p230_p1  ;;  %p2188_p8 = scmp.ge.s32.totalorder %s3011_s10, 1 }
  0x13   : > { %s3925_s14 = smov (%p37_p4, %s3923_s14), 0  ;;  %s3927_s15 = smov (!%p37_p4, %s39_s15), %s3007_s9 }
  0x14   : > { %3898 = sst [smem:[#allocation17_spill]] %s3925_s14  ;;  %p3129_p7 = por %p237_p5, %p236_p3 }
  0x15   : > { %p41_p9 = scmp.ge.s32.totalorder %s3927_s15, 2  ;;  %p310_p10 = scmp.lt.s32.totalorder %s3011_s10, 9 }
  0x16   : > { %s3899_s17 = scalar_select %p3129_p7, 1, 0 }
  0x17   : > { %s216_s18 = ssub.s32 %s3003_s8, %s3925_s14  ;;  %s3929_s15 = smov (%p41_p9, %s3927_s15), 0 }
  0x18   : > { %3900 = sst [smem:[#allocation18_spill]] %s3899_s17  ;;  %p311_p11 = pnand %p2188_p8, %p310_p10 }
  0x19   : > { %3901 = sst [smem:[#allocation19_spill]] %s3929_s15  ;;  %s215_s19 = ssub.s32 %s3007_s9, %s3929_s15 }
  0x1a   : > { %s217_s20 = sor.u32 %s216_s18, %s215_s19  ;;  %s220_s21 = sadd.s32 1, %s2983_s26 }
  0x1b   : > { %p218_p12 = scmp.eq.s32.totalorder %s217_s20, 0  ;;  %314 = sbr.rel (%p311_p11) target bundleno = 1526 (0x5f6), region = 48 }
  0x1c   : > { %s3882_s23 = sand.u32 (!%p311_p11), 1, %s2979_s25   ;;  %s3147_s11 = sshll.u32 (!%p311_p11), %s2991_s28, 4 }
  0x1d   : > { %s3143_s22 = scalar_select %p218_p12, %s2983_s26, %s220_s21  }
  0x1e   : > { %s2189_s12 = sshll.u32 (!%p311_p11), %s3882_s23, 7  ;;  %p367_p13 = scmp.lt.s32.totalorder (!%p311_p11), %s2995_s29, 1 }
  0x1f   : > { %3902 = sst [smem:[#allocation20_spill]] %s3143_s22  ;;  %p369_p0 = scmp.lt.s32.totalorder (!%p311_p11), %s3147_s11, 31 }
  0x20   : > { %p376_p1 = scmp.eq.s32.totalorder (!%p311_p11), %s2991_s28, 0  ;;  %s2196_s15 = sshll.u32 (!%p311_p11), %s2987_s27, 4 }
  0x21   : > { %p393_p2 = scmp.lt.s32.totalorder (!%p311_p11), %s2196_s15, 31  ;;  %s3173_s13 = scalar_lea.vmem (!%p311_p11), [#allocation7], %s2189_s12 }
  0x22   : > { %s368_s18 = scalar_select %p367_p13, %s2995_s29, 1 }
  0x23   : > { %s370_s19 = scalar_select %p369_p0, %s3147_s11, 31 }
  0x24   : > { %s2191_s20 = sshll.u32 %s368_s18, 5  ;;  %s3931_s15 = smov (!%p393_p2, %s2196_s15), 31 }
  0x25   : > { %s372_s21 = sadd.s32 %s2191_s20, %s370_s19  ;;  %s396_s23 = sadd.s32 %s2191_s20, %s3931_s15 }
  0x26   : > { %s2192_s14 = sshll.u32 %s372_s21, 3  ;;  %s2198_s26 = sshll.u32 %s396_s23, 3 }
  0x27   : > { %s3160_s8 = scalar_lea.vmem %s3869_s0, %s2192_s14  ;;  %s3166_s18 = scalar_lea.vmem %s3871_s2, %s2198_s26 }
  0x28   : > { %s377_s30 = scalar_select %p376_p1, %s2987_s27, 0 }
  0x29   : > { %p2199_p4 = scmp.ne.s32.totalorder %s2987_s27, 0 }
  0x2a   : > { %s2193_s22 = sshll.u32 %s377_s30, 4  ;;  %v421_v0 = vld [vmem:[%s3872_s3] sm:$0xff] (!%p2199_p4)  ;;  %v422_v1 = vld [vmem:[%s3872_s3 + $0x8] sm:$0xff] (!%p2199_p4)  ;;  %v423_v2 = vld [vmem:[%s3872_s3 + $0x10] sm:$0xff] (!%p2199_p4)  ;;  %vm436_vm0 = vcmask (!%p2199_p4), 523264   ;;  %vm646_vm1 = vcmask (!%p2199_p4), 7168  }
  0x2b   : > { %p381_p3 = scmp.lt.s32.totalorder %s2193_s22, 31  ;;  %404 = sbr.rel (%p2199_p4) target bundleno = 289 (0x121), region = 52  ;;  %v2580_v3 = vpack.c.bf16 (!%p2199_p4), %v422_v1, %v421_v0  ;;  %v424_v4 = vld [vmem:[%s3872_s3 + $0x18] sm:$0xff] (!%p2199_p4)  ;;  %v425_v6 = vld [vmem:[%s3872_s3 + $0x20] sm:$0xff] (!%p2199_p4)  ;;  %v426_v7 = vld [vmem:[%s3872_s3 + $0x28] sm:$0xff] (!%p2199_p4)  ;;  %v3013_v28 = vmov (!%p2199_p4), -inf  }
  0x2c   : > { %v2584_v5 = vpack.c.bf16 (!%p2199_p4), %v424_v4, %v423_v2  ;;  %v405_v8 = vld [vmem:[%s3160_s8] sm:$0xff] (!%p2199_p4)  ;;  %v2588_v10 = vpack.c.bf16 (!%p2199_p4), %v426_v7, %v425_v6  ;;  %v427_v11 = vld [vmem:[%s3872_s3 + $0x30] sm:$0xff] (!%p2199_p4)  ;;  %v428_v12 = vld [vmem:[%s3872_s3 + $0x38] sm:$0xff] (!%p2199_p4)  ;;  %647 = vst.msk [vmem:[#allocation4] sm:$0xff] (!%p2199_p4), %vm646_vm1, %v3013_v28  ;;  %v3014_v29 = vmov (!%p2199_p4), 0.0  }
  0x2d   : > { %s3933_s22 = smov (!%p381_p3, %s2193_s22), 31  ;;  %2581 = vmatprep.subr.bf16.mxu0 (!%p2199_p4), %v2580_v3  ;;  %2692 = vmatprep.subr.bf16.mxu1 (!%p2199_p4), %v2580_v3  ;;  %v413_v9 = vld [vmem:[%s3160_s8 + $0x40] sm:$0xff] (!%p2199_p4)  ;;  %v2592_v13 = vpack.c.bf16 (!%p2199_p4), %v428_v12, %v427_v11  ;;  %v406_v14 = vld [vmem:[%s3160_s8 + $0x8] sm:$0xff] (!%p2199_p4)  ;;  %v407_v16 = vld [vmem:[%s3160_s8 + $0x10] sm:$0xff] (!%p2199_p4)  ;;  %648 = vst.msk [vmem:[#allocation4 + $0x8] sm:$0xff] (!%p2199_p4), %vm646_vm1, %v3013_v28 }
  0x2e   : > { %s384_s19 = sadd.s32 %s2191_s20, %s3933_s22  ;;  %2583 = vmatpush3.bf16.msra.mxu0 (!%p2199_p4), %v2580_v3  ;;  %2696 = vmatpush3.bf16.msra.mxu1 (!%p2199_p4), %v2580_v3  ;;  %v414_v15 = vld [vmem:[%s3160_s8 + $0x48] sm:$0xff] (!%p2199_p4)  ;;  %v415_v17 = vld [vmem:[%s3160_s8 + $0x50] sm:$0xff] (!%p2199_p4)  ;;  %v408_v18 = vld [vmem:[%s3160_s8 + $0x18] sm:$0xff] (!%p2199_p4)  ;;  %649 = vst.msk [vmem:[#allocation4 + $0x10] sm:$0xff] (!%p2199_p4), %vm646_vm1, %v3013_v28 }
  0x2f   : > { %s2195_s21 = sshll.u32 %s384_s19, 3  ;;  %2585 = vmatprep.subr.bf16.mxu0 (!%p2199_p4), %v2584_v5  ;;  %2693 = vmatprep.subr.bf16.mxu1 (!%p2199_p4), %v2584_v5  ;;  %v416_v19 = vld [vmem:[%s3160_s8 + $0x58] sm:$0xff] (!%p2199_p4)  ;;  %v409_v20 = vld [vmem:[%s3160_s8 + $0x20] sm:$0xff] (!%p2199_p4)  ;;  %v410_v22 = vld [vmem:[%s3160_s8 + $0x28] sm:$0xff] (!%p2199_p4)  ;;  %650 = vst.msk [vmem:[#allocation4 + $0x18] sm:$0xff] (!%p2199_p4), %vm646_vm1, %v3013_v28 }
  0x30   : > { %s3171_s9 = scalar_lea.vmem %s3870_s1, %s2195_s21  ;;  %2404 = vmatprep.mubr.msk.f32.mxu0 (!%p2199_p4), %vm436_vm0, %v405_v8  ;;  %2416 = vmatprep.mubr.msk.f32.mxu1 (!%p2199_p4), %vm436_vm0, %v413_v9  ;;  %v417_v21 = vld [vmem:[%s3160_s8 + $0x60] sm:$0xff] (!%p2199_p4)  ;;  %v418_v23 = vld [vmem:[%s3160_s8 + $0x68] sm:$0xff] (!%p2199_p4)  ;;  %v411_v24 = vld [vmem:[%s3160_s8 + $0x30] sm:$0xff] (!%p2199_p4)  ;;  %651 = vst.msk [vmem:[#allocation4 + $0x20] sm:$0xff] (!%p2199_p4), %vm646_vm1, %v3013_v28 }
  0x31   : > { %v419_v25 = vld [vmem:[%s3160_s8 + $0x70] sm:$0xff] (!%p2199_p4)  ;;  %v412_v26 = vld [vmem:[%s3160_s8 + $0x38] sm:$0xff] (!%p2199_p4)  ;;  %652 = vst.msk [vmem:[#allocation4 + $0x28] sm:$0xff] (!%p2199_p4), %vm646_vm1, %v3013_v28  ;;  %653 = vst.msk [vmem:[#allocation4 + $0x30] sm:$0xff] (!%p2199_p4), %vm646_vm1, %v3013_v28 }
  0x32   : > { %2587 = vmatpush3.bf16.msra.mxu0 %v2584_v5  ;;  %2697 = vmatpush3.bf16.msra.mxu1 %v2584_v5  ;;  %v420_v27 = vld [vmem:[%s3160_s8 + $0x78] sm:$0xff]  ;;  %654 = vst.msk [vmem:[#allocation4 + $0x38] sm:$0xff] %vm646_vm1, %v3013_v28  ;;  %655 = vst.msk [vmem:[#allocation4 + $0x40] sm:$0xff] %vm646_vm1, %v3013_v28  ;;  %v2200_v30 = vld [vmem:[%s3873_s4] ss:$0 sm:$0xff] }
  0x33   : > { %2589 = vmatprep.subr.bf16.mxu0 %v2588_v10  ;;  %2694 = vmatprep.subr.bf16.mxu1 %v2588_v10  ;;  %656 = vst.msk [vmem:[#allocation4 + $0x48] sm:$0xff] %vm646_vm1, %v3013_v28  ;;  %657 = vst.msk [vmem:[#allocation4 + $0x50] sm:$0xff] %vm646_vm1, %v3013_v28 }
  0x34   : > { %658 = vst.msk [vmem:[#allocation4 + $0x58] sm:$0xff] %vm646_vm1, %v3013_v28  ;;  %659 = vst.msk [vmem:[#allocation4 + $0x60] sm:$0xff] %vm646_vm1, %v3013_v28 }
  0x35   : > { %660 = vst.msk [vmem:[#allocation4 + $0x68] sm:$0xff] %vm646_vm1, %v3013_v28  ;;  %661 = vst.msk [vmem:[#allocation4 + $0x70] sm:$0xff] %vm646_vm1, %v3013_v28 }
  0x36   : > { %2591 = vmatpush3.bf16.msra.mxu0 %v2588_v10  ;;  %2698 = vmatpush3.bf16.msra.mxu1 %v2588_v10  ;;  %662 = vst.msk [vmem:[#allocation4 + $0x78] sm:$0xff] %vm646_vm1, %v3013_v28  ;;  %663 = vst.msk [vmem:[#allocation5] sm:$0xff] %vm646_vm1, %v3014_v29 }
  0x37   : > { %2593 = vmatprep.subr.bf16.mxu0 %v2592_v13  ;;  %2695 = vmatprep.subr.bf16.mxu1 %v2592_v13  ;;  %664 = vst.msk [vmem:[#allocation5 + $0x8] sm:$0xff] %vm646_vm1, %v3014_v29  ;;  %665 = vst.msk [vmem:[#allocation5 + $0x10] sm:$0xff] %vm646_vm1, %v3014_v29 }
  0x38   : > { %666 = vst.msk [vmem:[#allocation5 + $0x18] sm:$0xff] %vm646_vm1, %v3014_v29  ;;  %667 = vst.msk [vmem:[#allocation5 + $0x20] sm:$0xff] %vm646_vm1, %v3014_v29 }
  0x39   : > { %668 = vst.msk [vmem:[#allocation5 + $0x28] sm:$0xff] %vm646_vm1, %v3014_v29  ;;  %669 = vst.msk [vmem:[#allocation5 + $0x30] sm:$0xff] %vm646_vm1, %v3014_v29 }
  0x3a   : > { %2595 = vmatpush3.bf16.msra.mxu0 %v2592_v13  ;;  %2699 = vmatpush3.bf16.msra.mxu1 %v2592_v13  ;;  %670 = vst.msk [vmem:[#allocation5 + $0x38] sm:$0xff] %vm646_vm1, %v3014_v29  ;;  %671 = vst.msk [vmem:[#allocation5 + $0x40] sm:$0xff] %vm646_vm1, %v3014_v29 }
  0x3b   : > { %672 = vst.msk [vmem:[#allocation5 + $0x48] sm:$0xff] %vm646_vm1, %v3014_v29  ;;  %673 = vst.msk [vmem:[#allocation5 + $0x50] sm:$0xff] %vm646_vm1, %v3014_v29 }
  0x3c   : > { %674 = vst.msk [vmem:[#allocation5 + $0x58] sm:$0xff] %vm646_vm1, %v3014_v29  ;;  %675 = vst.msk [vmem:[#allocation5 + $0x60] sm:$0xff] %vm646_vm1, %v3014_v29 }
  0x3d   : > { %2405 = vmatmul.mubr.msk.f32.vlgmr.msra.gmra.mrb[0].mxu0 %vm436_vm0, %v406_v14  ;;  %2417 = vmatmul.mubr.msk.f32.vlgmr.msra.gmra.mrb[0].mxu1 %vm436_vm0, %v414_v15  ;;  %676 = vst.msk [vmem:[#allocation5 + $0x68] sm:$0xff] %vm646_vm1, %v3014_v29  ;;  %677 = vst.msk [vmem:[#allocation5 + $0x70] sm:$0xff] %vm646_vm1, %v3014_v29 }
  0x3e   : > { %2407 = vmatprep.mubr.msk.f32.mxu0 %vm436_vm0, %v407_v16  ;;  %2419 = vmatprep.mubr.msk.f32.mxu1 %vm436_vm0, %v415_v17  ;;  %678 = vst.msk [vmem:[#allocation5 + $0x78] sm:$0xff] %vm646_vm1, %v3014_v29  ;;  %679 = vst [vmem:[#allocation6] sm:$0xff] %v3014_v29 }
  0x3f   : > { %680 = vst [vmem:[#allocation6 + $0x8] sm:$0xff] %v3014_v29  ;;  %681 = vst [vmem:[#allocation6 + $0x10] sm:$0xff] %v3014_v29 }
  0x40   : > { %682 = vst [vmem:[#allocation6 + $0x18] sm:$0xff] %v3014_v29  ;;  %683 = vst [vmem:[#allocation6 + $0x20] sm:$0xff] %v3014_v29 }
  0x41   : > { %2408 = vmatmul.mubr.msk.f32.gmra.mrb[2].mxu0 %vm436_vm0, %v408_v18  ;;  %2420 = vmatmul.mubr.msk.f32.gmra.mrb[2].mxu1 %vm436_vm0, %v416_v19  ;;  %684 = vst [vmem:[#allocation6 + $0x28] sm:$0xff] %v3014_v29  ;;  %685 = vst [vmem:[#allocation6 + $0x30] sm:$0xff] %v3014_v29 }
  0x42   : > { %2410 = vmatprep.mubr.msk.f32.mxu0 %vm436_vm0, %v409_v20  ;;  %2422 = vmatprep.mubr.msk.f32.mxu1 %vm436_vm0, %v417_v21  ;;  %686 = vst [vmem:[#allocation6 + $0x38] sm:$0xff] %v3014_v29  ;;  %687 = vst [vmem:[#allocation6 + $0x40] sm:$0xff] %v3014_v29 }
  0x43   : > { %688 = vst [vmem:[#allocation6 + $0x48] sm:$0xff] %v3014_v29  ;;  %689 = vst [vmem:[#allocation6 + $0x50] sm:$0xff] %v3014_v29 }
  0x44   : > { %690 = vst [vmem:[#allocation6 + $0x58] sm:$0xff] %v3014_v29  ;;  %691 = vst [vmem:[#allocation6 + $0x60] sm:$0xff] %v3014_v29 }
  0x45   : > { %2411 = vmatmul.mubr.msk.f32.gmra.mrb[4].mxu0 %vm436_vm0, %v410_v22  ;;  %2423 = vmatmul.mubr.msk.f32.gmra.mrb[4].mxu1 %vm436_vm0, %v418_v23  ;;  %692 = vst [vmem:[#allocation6 + $0x68] sm:$0xff] %v3014_v29  ;;  %693 = vst [vmem:[#allocation6 + $0x70] sm:$0xff] %v3014_v29 }
  0x46   : > { %2413 = vmatprep.mubr.msk.f32.mxu0 %vm436_vm0, %v411_v24  ;;  %2425 = vmatprep.mubr.msk.f32.mxu1 %vm436_vm0, %v419_v25  ;;  %694 = vst [vmem:[#allocation6 + $0x78] sm:$0xff] %v3014_v29 }
  0x49   : > { %2414 = vmatmul.mubr.msk.f32.gmra.mrb[6].mxu0 %vm436_vm0, %v412_v26  ;;  %2426 = vmatmul.mubr.msk.f32.gmra.mrb[6].mxu1 %vm436_vm0, %v420_v27 }
 0x110   : > { %v2406_v31 = vpop.f32.mrb[0].mxu0  ;;  %v2418_v32 = vpop.f32.mrb[0].mxu1 }
 0x111   : > { %v557_v33 = vadd.f32 %v2406_v31, %v2200_v30  ;;  %v597_v34 = vadd.f32 %v2418_v32, %v2200_v30  ;;  %v551_v35 = vpop.f32.mrb[1].mxu0  ;;  %v591_v36 = vpop.f32.mrb[1].mxu1 }
 0x112   : > { %v552_v37 = vadd.f32 %v2200_v30, %v551_v35  ;;  %v592_v38 = vadd.f32 %v2200_v30, %v591_v36 }
 0x113   : > { %631 = vst.msk [vmem:[#allocation2 + $0x8] sm:$0xff] %vm436_vm0, %v557_v33  ;;  %639 = vst.msk [vmem:[#allocation2 + $0x48] sm:$0xff] %vm436_vm0, %v597_v34 }
 0x114   : > { %630 = vst.msk [vmem:[#allocation2] sm:$0xff] %vm436_vm0, %v552_v37  ;;  %638 = vst.msk [vmem:[#allocation2 + $0x40] sm:$0xff] %vm436_vm0, %v592_v38  ;;  %v2409_v39 = vpop.f32.mrb[2].mxu0  ;;  %v2421_v40 = vpop.f32.mrb[2].mxu1 }
 0x115   : > { %v567_v41 = vadd.f32 %v2409_v39, %v2200_v30  ;;  %v607_v42 = vadd.f32 %v2421_v40, %v2200_v30  ;;  %v561_v43 = vpop.f32.mrb[3].mxu0  ;;  %v601_v44 = vpop.f32.mrb[3].mxu1 }
 0x116   : > { %v562_v45 = vadd.f32 %v2200_v30, %v561_v43  ;;  %v602_v46 = vadd.f32 %v2200_v30, %v601_v44 }
 0x117   : > { %633 = vst.msk [vmem:[#allocation2 + $0x18] sm:$0xff] %vm436_vm0, %v567_v41  ;;  %641 = vst.msk [vmem:[#allocation2 + $0x58] sm:$0xff] %vm436_vm0, %v607_v42 }
 0x118   : > { %632 = vst.msk [vmem:[#allocation2 + $0x10] sm:$0xff] %vm436_vm0, %v562_v45  ;;  %640 = vst.msk [vmem:[#allocation2 + $0x50] sm:$0xff] %vm436_vm0, %v602_v46  ;;  %v2412_v47 = vpop.f32.mrb[4].mxu0  ;;  %v2424_v48 = vpop.f32.mrb[4].mxu1 }
 0x119   : > { %v577_v49 = vadd.f32 %v2412_v47, %v2200_v30  ;;  %v617_v50 = vadd.f32 %v2424_v48, %v2200_v30  ;;  %v571_v51 = vpop.f32.mrb[5].mxu0  ;;  %v611_v52 = vpop.f32.mrb[5].mxu1 }
 0x11a   : > { %v572_v53 = vadd.f32 %v2200_v30, %v571_v51  ;;  %v612_v54 = vadd.f32 %v2200_v30, %v611_v52 }
 0x11b   : > { %635 = vst.msk [vmem:[#allocation2 + $0x28] sm:$0xff] %vm436_vm0, %v577_v49  ;;  %643 = vst.msk [vmem:[#allocation2 + $0x68] sm:$0xff] %vm436_vm0, %v617_v50 }
 0x11c   : > { %634 = vst.msk [vmem:[#allocation2 + $0x20] sm:$0xff] %vm436_vm0, %v572_v53  ;;  %642 = vst.msk [vmem:[#allocation2 + $0x60] sm:$0xff] %vm436_vm0, %v612_v54  ;;  %v2415_v55 = vpop.f32.mrb[6].mxu0  ;;  %v2427_v56 = vpop.f32.mrb[6].mxu1 }
 0x11d   : > { %v587_v57 = vadd.f32 %v2415_v55, %v2200_v30  ;;  %v627_v58 = vadd.f32 %v2427_v56, %v2200_v30  ;;  %v581_v59 = vpop.f32.mrb[7].mxu0  ;;  %v621_v60 = vpop.f32.mrb[7].mxu1 }
 0x11e   : > { %v582_v61 = vadd.f32 %v2200_v30, %v581_v59  ;;  %v622_v62 = vadd.f32 %v2200_v30, %v621_v60 }
 0x11f   : > { %637 = vst.msk [vmem:[#allocation2 + $0x38] sm:$0xff] %vm436_vm0, %v587_v57  ;;  %645 = vst.msk [vmem:[#allocation2 + $0x78] sm:$0xff] %vm436_vm0, %v627_v58 }
 0x120   : > { %636 = vst.msk [vmem:[#allocation2 + $0x30] sm:$0xff] %vm436_vm0, %v582_v61  ;;  %644 = vst.msk [vmem:[#allocation2 + $0x70] sm:$0xff] %vm436_vm0, %v622_v62 }
 0x121 PF: > { %p2217_p5 = scmp.ne.s32.totalorder %s2991_s28, 0 }
 0x122   : > { %v715_v63 = vld [vmem:[%s3874_s5] sm:$0xff] (!%p2217_p5)  ;;  %v716_v0 = vld [vmem:[%s3874_s5 + $0x8] sm:$0xff] (!%p2217_p5)  ;;  %v717_v1 = vld [vmem:[%s3874_s5 + $0x10] sm:$0xff] (!%p2217_p5)  ;;  %vm730_vm2 = vcmask (!%p2217_p5), 523264   ;;  %s2235_s26 = sshll.u32 (!%p2217_p5), %s2987_s27, 7 }
 0x123   : > { %698 = sbr.rel (%p2217_p5) target bundleno = 537 (0x219), region = 56  ;;  %v2596_v2 = vpack.c.bf16 (!%p2217_p5), %v716_v0, %v715_v63  ;;  %v718_v3 = vld [vmem:[%s3874_s5 + $0x18] sm:$0xff] (!%p2217_p5)  ;;  %v719_v5 = vld [vmem:[%s3874_s5 + $0x20] sm:$0xff] (!%p2217_p5)  ;;  %v720_v6 = vld [vmem:[%s3874_s5 + $0x28] sm:$0xff] (!%p2217_p5)  ;;  %s3344_s7 = scalar_lea.vmem (!%p2217_p5), [#allocation3], %s2235_s26 }
 0x124   : > { %v2600_v4 = vpack.c.bf16 (!%p2217_p5), %v718_v3, %v717_v1  ;;  %v699_v7 = vld [vmem:[%s3171_s9] sm:$0xff] (!%p2217_p5)  ;;  %v2604_v9 = vpack.c.bf16 (!%p2217_p5), %v720_v6, %v719_v5  ;;  %v721_v10 = vld [vmem:[%s3874_s5 + $0x30] sm:$0xff] (!%p2217_p5)  ;;  %v722_v11 = vld [vmem:[%s3874_s5 + $0x38] sm:$0xff] (!%p2217_p5) }
 0x125   : > { %2597 = vmatprep.subr.bf16.mxu0 (!%p2217_p5), %v2596_v2  ;;  %2700 = vmatprep.subr.bf16.mxu1 (!%p2217_p5), %v2596_v2  ;;  %v707_v8 = vld [vmem:[%s3171_s9 + $0x40] sm:$0xff] (!%p2217_p5)  ;;  %v2608_v12 = vpack.c.bf16 (!%p2217_p5), %v722_v11, %v721_v10  ;;  %v700_v13 = vld [vmem:[%s3171_s9 + $0x8] sm:$0xff] (!%p2217_p5)  ;;  %v701_v15 = vld [vmem:[%s3171_s9 + $0x10] sm:$0xff] (!%p2217_p5) }
 0x126   : > { %2599 = vmatpush3.bf16.msra.mxu0 (!%p2217_p5), %v2596_v2  ;;  %2704 = vmatpush3.bf16.msra.mxu1 (!%p2217_p5), %v2596_v2  ;;  %v708_v14 = vld [vmem:[%s3171_s9 + $0x48] sm:$0xff] (!%p2217_p5)  ;;  %v709_v16 = vld [vmem:[%s3171_s9 + $0x50] sm:$0xff] (!%p2217_p5)  ;;  %v702_v17 = vld [vmem:[%s3171_s9 + $0x18] sm:$0xff] (!%p2217_p5) }
 0x127   : > { %2601 = vmatprep.subr.bf16.mxu0 (!%p2217_p5), %v2600_v4  ;;  %2701 = vmatprep.subr.bf16.mxu1 (!%p2217_p5), %v2600_v4  ;;  %v710_v18 = vld [vmem:[%s3171_s9 + $0x58] sm:$0xff] (!%p2217_p5)  ;;  %v703_v19 = vld [vmem:[%s3171_s9 + $0x20] sm:$0xff] (!%p2217_p5)  ;;  %v704_v21 = vld [vmem:[%s3171_s9 + $0x28] sm:$0xff] (!%p2217_p5) }
 0x128   : > { %2444 = vmatprep.mubr.msk.f32.mxu0 (!%p2217_p5), %vm730_vm2, %v699_v7  ;;  %2456 = vmatprep.mubr.msk.f32.mxu1 (!%p2217_p5), %vm730_vm2, %v707_v8  ;;  %v711_v20 = vld [vmem:[%s3171_s9 + $0x60] sm:$0xff] (!%p2217_p5)  ;;  %v712_v22 = vld [vmem:[%s3171_s9 + $0x68] sm:$0xff] (!%p2217_p5)  ;;  %v705_v23 = vld [vmem:[%s3171_s9 + $0x30] sm:$0xff] (!%p2217_p5) }
 0x129   : > { %v713_v24 = vld [vmem:[%s3171_s9 + $0x70] sm:$0xff] (!%p2217_p5)  ;;  %v706_v25 = vld [vmem:[%s3171_s9 + $0x38] sm:$0xff] (!%p2217_p5)  ;;  %v2218_v27 = vld [vmem:[%s3875_s6] ss:$0 sm:$0xff] (!%p2217_p5) }
 0x12a   : > { %2603 = vmatpush3.bf16.msra.mxu0 %v2600_v4  ;;  %2705 = vmatpush3.bf16.msra.mxu1 %v2600_v4  ;;  %v714_v26 = vld [vmem:[%s3171_s9 + $0x78] sm:$0xff] }
 0x12b   : > { %2605 = vmatprep.subr.bf16.mxu0 %v2604_v9  ;;  %2702 = vmatprep.subr.bf16.mxu1 %v2604_v9 }
 0x12e   : > { %2607 = vmatpush3.bf16.msra.mxu0 %v2604_v9  ;;  %2706 = vmatpush3.bf16.msra.mxu1 %v2604_v9 }
 0x12f   : > { %2609 = vmatprep.subr.bf16.mxu0 %v2608_v12  ;;  %2703 = vmatprep.subr.bf16.mxu1 %v2608_v12 }
 0x132   : > { %2611 = vmatpush3.bf16.msra.mxu0 %v2608_v12  ;;  %2707 = vmatpush3.bf16.msra.mxu1 %v2608_v12 }
 0x135   : > { %2445 = vmatmul.mubr.msk.f32.vlgmr.msra.gmra.mrb[0].mxu0 %vm730_vm2, %v700_v13  ;;  %2457 = vmatmul.mubr.msk.f32.vlgmr.msra.gmra.mrb[0].mxu1 %vm730_vm2, %v708_v14 }
 0x136   : > { %2447 = vmatprep.mubr.msk.f32.mxu0 %vm730_vm2, %v701_v15  ;;  %2459 = vmatprep.mubr.msk.f32.mxu1 %vm730_vm2, %v709_v16 }
 0x139   : > { %2448 = vmatmul.mubr.msk.f32.gmra.mrb[2].mxu0 %vm730_vm2, %v702_v17  ;;  %2460 = vmatmul.mubr.msk.f32.gmra.mrb[2].mxu1 %vm730_vm2, %v710_v18 }
 0x13a   : > { %2450 = vmatprep.mubr.msk.f32.mxu0 %vm730_vm2, %v703_v19  ;;  %2462 = vmatprep.mubr.msk.f32.mxu1 %vm730_vm2, %v711_v20 }
 0x13d   : > { %2451 = vmatmul.mubr.msk.f32.gmra.mrb[4].mxu0 %vm730_vm2, %v704_v21  ;;  %2463 = vmatmul.mubr.msk.f32.gmra.mrb[4].mxu1 %vm730_vm2, %v712_v22 }
 0x13e   : > { %2453 = vmatprep.mubr.msk.f32.mxu0 %vm730_vm2, %v705_v23  ;;  %2465 = vmatprep.mubr.msk.f32.mxu1 %vm730_vm2, %v713_v24 }
 0x141   : > { %2454 = vmatmul.mubr.msk.f32.gmra.mrb[6].mxu0 %vm730_vm2, %v706_v25  ;;  %2466 = vmatmul.mubr.msk.f32.gmra.mrb[6].mxu1 %vm730_vm2, %v714_v26 }
 0x208   : > { %v2446_v28 = vpop.f32.mrb[0].mxu0  ;;  %v2458_v29 = vpop.f32.mrb[0].mxu1 }
 0x209   : > { %v851_v30 = vadd.f32 %v2446_v28, %v2218_v27  ;;  %v891_v31 = vadd.f32 %v2458_v29, %v2218_v27  ;;  %v845_v32 = vpop.f32.mrb[1].mxu0  ;;  %v885_v33 = vpop.f32.mrb[1].mxu1 }
 0x20a   : > { %v846_v34 = vadd.f32 %v2218_v27, %v845_v32  ;;  %v886_v35 = vadd.f32 %v2218_v27, %v885_v33 }
 0x20b   : > { %927 = vst.msk [vmem:[%s3344_s7 + $0x8] sm:$0xff] %vm730_vm2, %v851_v30  ;;  %935 = vst.msk [vmem:[%s3344_s7 + $0x48] sm:$0xff] %vm730_vm2, %v891_v31 }
 0x20c   : > { %926 = vst.msk [vmem:[%s3344_s7] sm:$0xff] %vm730_vm2, %v846_v34  ;;  %934 = vst.msk [vmem:[%s3344_s7 + $0x40] sm:$0xff] %vm730_vm2, %v886_v35  ;;  %v2449_v36 = vpop.f32.mrb[2].mxu0  ;;  %v2461_v37 = vpop.f32.mrb[2].mxu1 }
 0x20d   : > { %v861_v38 = vadd.f32 %v2449_v36, %v2218_v27  ;;  %v901_v39 = vadd.f32 %v2461_v37, %v2218_v27  ;;  %v855_v40 = vpop.f32.mrb[3].mxu0  ;;  %v895_v41 = vpop.f32.mrb[3].mxu1 }
 0x20e   : > { %v856_v42 = vadd.f32 %v2218_v27, %v855_v40  ;;  %v896_v43 = vadd.f32 %v2218_v27, %v895_v41 }
 0x20f   : > { %929 = vst.msk [vmem:[%s3344_s7 + $0x18] sm:$0xff] %vm730_vm2, %v861_v38  ;;  %937 = vst.msk [vmem:[%s3344_s7 + $0x58] sm:$0xff] %vm730_vm2, %v901_v39 }
 0x210   : > { %928 = vst.msk [vmem:[%s3344_s7 + $0x10] sm:$0xff] %vm730_vm2, %v856_v42  ;;  %936 = vst.msk [vmem:[%s3344_s7 + $0x50] sm:$0xff] %vm730_vm2, %v896_v43  ;;  %v2452_v44 = vpop.f32.mrb[4].mxu0  ;;  %v2464_v45 = vpop.f32.mrb[4].mxu1 }
 0x211   : > { %v871_v46 = vadd.f32 %v2452_v44, %v2218_v27  ;;  %v911_v47 = vadd.f32 %v2464_v45, %v2218_v27  ;;  %v865_v48 = vpop.f32.mrb[5].mxu0  ;;  %v905_v49 = vpop.f32.mrb[5].mxu1 }
 0x212   : > { %v866_v50 = vadd.f32 %v2218_v27, %v865_v48  ;;  %v906_v51 = vadd.f32 %v2218_v27, %v905_v49 }
 0x213   : > { %931 = vst.msk [vmem:[%s3344_s7 + $0x28] sm:$0xff] %vm730_vm2, %v871_v46  ;;  %939 = vst.msk [vmem:[%s3344_s7 + $0x68] sm:$0xff] %vm730_vm2, %v911_v47 }
 0x214   : > { %930 = vst.msk [vmem:[%s3344_s7 + $0x20] sm:$0xff] %vm730_vm2, %v866_v50  ;;  %938 = vst.msk [vmem:[%s3344_s7 + $0x60] sm:$0xff] %vm730_vm2, %v906_v51  ;;  %v2455_v52 = vpop.f32.mrb[6].mxu0  ;;  %v2467_v53 = vpop.f32.mrb[6].mxu1 }
 0x215   : > { %v881_v54 = vadd.f32 %v2455_v52, %v2218_v27  ;;  %v921_v55 = vadd.f32 %v2467_v53, %v2218_v27  ;;  %v875_v56 = vpop.f32.mrb[7].mxu0  ;;  %v915_v57 = vpop.f32.mrb[7].mxu1 }
 0x216   : > { %v876_v58 = vadd.f32 %v2218_v27, %v875_v56  ;;  %v916_v59 = vadd.f32 %v2218_v27, %v915_v57 }
 0x217   : > { %933 = vst.msk [vmem:[%s3344_s7 + $0x38] sm:$0xff] %vm730_vm2, %v881_v54  ;;  %941 = vst.msk [vmem:[%s3344_s7 + $0x78] sm:$0xff] %vm730_vm2, %v921_v55 }
 0x218   : > { %932 = vst.msk [vmem:[%s3344_s7 + $0x30] sm:$0xff] %vm730_vm2, %v876_v58  ;;  %940 = vst.msk [vmem:[%s3344_s7 + $0x70] sm:$0xff] %vm730_vm2, %v916_v59 }
 0x219 PF: > { %s2236_s9 = sshll.u32 %s2987_s27, 7  ;;  %vm976_vm3 = vcmask 523264   ;;  %v960_v60 = vld [vmem:[#allocation2] sm:$0xff]  ;;  %v961_v22 = vld [vmem:[#allocation2 + $0x8] sm:$0xff]  ;;  %v962_v23 = vld [vmem:[#allocation2 + $0x10] sm:$0xff]  ;;  %v3015_v47 = vmov 0  }
 0x21a   : > { %vm3381_vm4 = vmpackc.low %vm976_vm3, %vm976_vm3  ;;  %2500 = vmatprep.mubr.msk.f32.mxu0 %vm976_vm3, %v960_v60  ;;  %s3386_s10 = scalar_lea.vmem [#allocation3], %s2236_s9  ;;  %v963_v24 = vld [vmem:[#allocation2 + $0x18] sm:$0xff]  ;;  %v964_v25 = vld [vmem:[#allocation2 + $0x20] sm:$0xff]  ;;  %2801 = vset.pattern.permute.xlu0 %v3015_v47  ;;  %vm1538_vm5 = vcmask 7168   ;;  %p2269_p8 = scmp.ne.s32.totalorder %s2987_s27, 1 }
 0x21b   : > { %v965_v26 = vld [vmem:[#allocation2 + $0x28] sm:$0xff]  ;;  %v966_v27 = vld [vmem:[#allocation2 + $0x30] sm:$0xff]  ;;  %v967_v28 = vld [vmem:[#allocation2 + $0x38] sm:$0xff]  ;;  %2802 = vset.pattern.permute.xlu1 %v3015_v47 }
 0x21c   : > { %v968_v29 = vld [vmem:[#allocation2 + $0x40] sm:$0xff]  ;;  %v969_v30 = vld [vmem:[#allocation2 + $0x48] sm:$0xff]  ;;  %v970_v31 = vld [vmem:[#allocation2 + $0x50] sm:$0xff] }
 0x21d   : > { %v971_v32 = vld [vmem:[#allocation2 + $0x58] sm:$0xff]  ;;  %v972_v33 = vld [vmem:[#allocation2 + $0x60] sm:$0xff]  ;;  %v973_v34 = vld [vmem:[#allocation2 + $0x68] sm:$0xff] }
 0x21e   : > { %v974_v35 = vld [vmem:[#allocation2 + $0x70] sm:$0xff]  ;;  %v975_v36 = vld [vmem:[#allocation2 + $0x78] sm:$0xff]  ;;  %v1667_v54 = vld [vmem:[%s3166_s18] sm:$0xff] }
 0x21f   : > { %v944_v62 = vld [vmem:[%s3386_s10] sm:$0xff]  ;;  %v945_v63 = vld [vmem:[%s3386_s10 + $0x8] sm:$0xff]  ;;  %v946_v0 = vld [vmem:[%s3386_s10 + $0x10] sm:$0xff] }
 0x220   : > { %v2612_v1 = vpack.c.bf16 %v945_v63, %v944_v62  ;;  %v947_v2 = vld [vmem:[%s3386_s10 + $0x18] sm:$0xff]  ;;  %v948_v4 = vld [vmem:[%s3386_s10 + $0x20] sm:$0xff]  ;;  %v949_v5 = vld [vmem:[%s3386_s10 + $0x28] sm:$0xff] }
 0x221   : > { %v2618_v3 = vpack.c.bf16 %v947_v2, %v946_v0  ;;  %v2624_v6 = vpack.c.bf16 %v949_v5, %v948_v4  ;;  %v950_v7 = vld [vmem:[%s3386_s10 + $0x30] sm:$0xff]  ;;  %v951_v8 = vld [vmem:[%s3386_s10 + $0x38] sm:$0xff]  ;;  %v952_v10 = vld [vmem:[%s3386_s10 + $0x40] sm:$0xff] }
 0x222   : > { %2614 = vmatprep.subr.msk.bf16.mxu0 %vm3381_vm4, %v2612_v1  ;;  %v2630_v9 = vpack.c.bf16 %v951_v8, %v950_v7  ;;  %v953_v11 = vld [vmem:[%s3386_s10 + $0x48] sm:$0xff]  ;;  %v954_v13 = vld [vmem:[%s3386_s10 + $0x50] sm:$0xff]  ;;  %v955_v14 = vld [vmem:[%s3386_s10 + $0x58] sm:$0xff] }
 0x223   : > { %2617 = vmatpush3.bf16.xpose.msk.msra.mxu0 %vm3381_vm4, %v2612_v1  ;;  %v2636_v12 = vpack.c.bf16 %v953_v11, %v952_v10  ;;  %v2642_v15 = vpack.c.bf16 %v955_v14, %v954_v13  ;;  %v956_v16 = vld [vmem:[%s3386_s10 + $0x60] sm:$0xff]  ;;  %v957_v17 = vld [vmem:[%s3386_s10 + $0x68] sm:$0xff]  ;;  %v958_v19 = vld [vmem:[%s3386_s10 + $0x70] sm:$0xff] }
 0x224   : > { %2620 = vmatprep.subr.msk.bf16.mxu0 %vm3381_vm4, %v2618_v3  ;;  %v2648_v18 = vpack.c.bf16 %v957_v17, %v956_v16  ;;  %v959_v20 = vld [vmem:[%s3386_s10 + $0x78] sm:$0xff]  ;;  %v1668_v55 = vld [vmem:[%s3166_s18 + $0x8] sm:$0xff]  ;;  %v1669_v56 = vld [vmem:[%s3166_s18 + $0x10] sm:$0xff] }
 0x225   : > { %v2654_v21 = vpack.c.bf16 %v959_v20, %v958_v19  ;;  %v2660_v57 = vpack.c.bf16 %v1668_v55, %v1667_v54  ;;  %v1670_v58 = vld [vmem:[%s3166_s18 + $0x18] sm:$0xff]  ;;  %v1671_v60 = vld [vmem:[%s3166_s18 + $0x20] sm:$0xff]  ;;  %v1672_v61 = vld [vmem:[%s3166_s18 + $0x28] sm:$0xff] }
 0x226   : > { %v2664_v59 = vpack.c.bf16 %v1670_v58, %v1669_v56  ;;  %v2668_v62 = vpack.c.bf16 %v1672_v61, %v1671_v60  ;;  %v1673_v63 = vld [vmem:[%s3166_s18 + $0x30] sm:$0xff]  ;;  %v1674_v0 = vld [vmem:[%s3166_s18 + $0x38] sm:$0xff]  ;;  %v3507_v2 = vld [vmem:[#allocation4] sm:$0xff] }
 0x227   : > { %2661 = vmatprep.subr.bf16.mxu1 %v2660_v57  ;;  %v2672_v1 = vpack.c.bf16 %v1674_v0, %v1673_v63  ;;  %v3512_v5 = vld [vmem:[#allocation4 + $0x18] sm:$0xff]  ;;  %v1675_v8 = vld [vmem:[%s3166_s18 + $0x40] sm:$0xff]  ;;  %v3527_v14 = vld [vmem:[#allocation4 + $0x10] sm:$0xff] }
 0x228   : > { %2663 = vmatpush3.bf16.msra.mxu1 %v2660_v57  ;;  %v1677_v17 = vld [vmem:[%s3166_s18 + $0x50] sm:$0xff]  ;;  %v1227_v56 = vld [vmem:[#allocation4 + $0x48] sm:$0xff]  ;;  %v1229_v63 = vld [vmem:[#allocation4 + $0x58] sm:$0xff] }
 0x229   : > { %2665 = vmatprep.subr.bf16.mxu1 %v2664_v59  ;;  %v3574_v58 = vld [vmem:[#allocation4 + $0x50] sm:$0xff] }
 0x22b   : > { %2623 = vmatpush3.bf16.xpose.msk.msra.mxu0 %vm3381_vm4, %v2618_v3 }
 0x22c   : > { %2626 = vmatprep.subr.msk.bf16.mxu0 %vm3381_vm4, %v2624_v6  ;;  %2667 = vmatpush3.bf16.msra.mxu1 %v2664_v59 }
 0x22d   : > { %2669 = vmatprep.subr.bf16.mxu1 %v2668_v62 }
 0x230   : > { %2671 = vmatpush3.bf16.msra.mxu1 %v2668_v62 }
 0x231   : > { %2673 = vmatprep.subr.bf16.mxu1 %v2672_v1 }
 0x233   : > { %2629 = vmatpush3.bf16.xpose.msk.msra.mxu0 %vm3381_vm4, %v2624_v6  ;;  %v3514_v6 = vld [vmem:[#allocation4 + $0x8] sm:$0xff] }
 0x234   : > { %2632 = vmatprep.subr.msk.bf16.mxu0 %vm3381_vm4, %v2630_v9  ;;  %2675 = vmatpush3.bf16.msra.mxu1 %v2672_v1  ;;  %v3584_v1 = vld [vmem:[#allocation4 + $0x60] sm:$0xff] }
 0x23b   : > { %2635 = vmatpush3.bf16.xpose.msk.msra.mxu0 %vm3381_vm4, %v2630_v9  ;;  %v1676_v9 = vld [vmem:[%s3166_s18 + $0x48] sm:$0xff] }
 0x23c   : > { %2638 = vmatprep.subr.msk.bf16.mxu0 %vm3381_vm4, %v2636_v12 }
 0x243   : > { %2641 = vmatpush3.bf16.xpose.msk.msra.mxu0 %vm3381_vm4, %v2636_v12  ;;  %v2676_v12 = vpack.c.bf16 %v1676_v9, %v1675_v8  ;;  %v1231_v9 = vld [vmem:[#allocation4 + $0x68] sm:$0xff] }
 0x244   : > { %2644 = vmatprep.subr.msk.bf16.mxu0 %vm3381_vm4, %v2642_v15 }
 0x245   : > { %2677 = vmatprep.subr.bf16.mxu1 %v2676_v12 }
 0x246   : > { %2679 = vmatpush3.bf16.msra.mxu1 %v2676_v12  ;;  %v3595_v12 = vld [vmem:[#allocation4 + $0x70] sm:$0xff] }
 0x24b   : > { %2647 = vmatpush3.bf16.xpose.msk.msra.mxu0 %vm3381_vm4, %v2642_v15  ;;  %v3531_v15 = vld [vmem:[#allocation4 + $0x20] sm:$0xff] }
 0x24c   : > { %2650 = vmatprep.subr.msk.bf16.mxu0 %vm3381_vm4, %v2648_v18 }
 0x253   : > { %2653 = vmatpush3.bf16.xpose.msk.msra.mxu0 %vm3381_vm4, %v2648_v18  ;;  %v1678_v18 = vld [vmem:[%s3166_s18 + $0x58] sm:$0xff] }
 0x254   : > { %2656 = vmatprep.subr.msk.bf16.mxu0 %vm3381_vm4, %v2654_v21 }
 0x25b   : > { %2659 = vmatpush3.bf16.xpose.msk.msra.mxu0 %vm3381_vm4, %v2654_v21  ;;  %v2680_v21 = vpack.c.bf16 %v1678_v18, %v1677_v17 }
 0x25d   : > { %2681 = vmatprep.subr.bf16.mxu1 %v2680_v21 }
 0x25e   : > { %2683 = vmatpush3.bf16.msra.mxu1 %v2680_v21 }
 0x262   : > { %2501 = vmatmul.mubr.msk.f32.vlgmr.msra.gmra.mrb[0].mxu0 %vm976_vm3, %v961_v22  ;;  %v3541_v22 = vld [vmem:[#allocation4 + $0x28] sm:$0xff] }
 0x263   : > { %2503 = vmatprep.mubr.msk.f32.mxu0 %vm976_vm3, %v962_v23 }
 0x266   : > { %2504 = vmatmul.mubr.msk.f32.gmra.mrb[2].mxu0 %vm976_vm3, %v963_v24  ;;  %v3548_v24 = vld [vmem:[#allocation4 + $0x30] sm:$0xff] }
 0x267   : > { %2506 = vmatprep.mubr.msk.f32.mxu0 %vm976_vm3, %v964_v25 }
 0x26a   : > { %2507 = vmatmul.mubr.msk.f32.gmra.mrb[4].mxu0 %vm976_vm3, %v965_v26  ;;  %v1679_v26 = vld [vmem:[%s3166_s18 + $0x60] sm:$0xff] }
 0x26b   : > { %2509 = vmatprep.mubr.msk.f32.mxu0 %vm976_vm3, %v966_v27  ;;  %v1680_v27 = vld [vmem:[%s3166_s18 + $0x68] sm:$0xff] }
 0x26e   : > { %2510 = vmatmul.mubr.msk.f32.gmra.mrb[6].mxu0 %vm976_vm3, %v967_v28 }
 0x26f   : > { %2512 = vmatprep.mubr.msk.f32.mxu0 %vm976_vm3, %v968_v29 }
 0x272   : > { %2513 = vmatmul.mubr.msk.f32.gmra.mrb[8].mxu0 %vm976_vm3, %v969_v30  ;;  %v2684_v30 = vpack.c.bf16 %v1680_v27, %v1679_v26 }
 0x273   : > { %2515 = vmatprep.mubr.msk.f32.mxu0 %vm976_vm3, %v970_v31  ;;  %v3556_v31 = vld [vmem:[#allocation4 + $0x38] sm:$0xff] }
 0x274   : > { %2685 = vmatprep.subr.bf16.mxu1 %v2684_v30 }
 0x275   : > { %2687 = vmatpush3.bf16.msra.mxu1 %v2684_v30 }
 0x276   : > { %2516 = vmatmul.mubr.msk.f32.gmra.mrb[10].mxu0 %vm976_vm3, %v971_v32 }
 0x277   : > { %2518 = vmatprep.mubr.msk.f32.mxu0 %vm976_vm3, %v972_v33  ;;  %v3562_v33 = vld [vmem:[#allocation4 + $0x40] sm:$0xff] }
 0x27a   : > { %2519 = vmatmul.mubr.msk.f32.gmra.mrb[12].mxu0 %vm976_vm3, %v973_v34 }
 0x27b   : > { %2521 = vmatprep.mubr.msk.f32.mxu0 %vm976_vm3, %v974_v35  ;;  %v1681_v35 = vld [vmem:[%s3166_s18 + $0x70] sm:$0xff] }
 0x27e   : > { %2522 = vmatmul.mubr.msk.f32.gmra.mrb[14].mxu0 %vm976_vm3, %v975_v36  ;;  %v1682_v36 = vld [vmem:[%s3166_s18 + $0x78] sm:$0xff] }
 0x27f   : > { %v2688_v55 = vpack.c.bf16 %v1682_v36, %v1681_v35 }
 0x281   : > { %2689 = vmatprep.subr.bf16.mxu1 %v2688_v55 }
 0x282   : > { %2691 = vmatpush3.bf16.msra.mxu1 %v2688_v55 }
 0x335   : > { %v3451_v37 = vpop.f32.mrb[0].mxu0 }
 0x336   : > { %v3453_v38 = vpop.f32.mrb[1].mxu0 }
 0x337   : > { %1234 = vmax.xlane.f32.xlu0 %v3453_v38 }
 0x339   : > { %v3456_v39 = vpop.f32.mrb[2].mxu0 }
 0x33a   : > { %1240 = vmax.xlane.f32.xlu1 %v3456_v39  ;;  %v3459_v40 = vpop.f32.mrb[3].mxu0 }
 0x33b   : > { %1236 = vmax.xlane.f32.xlu0 %v3451_v37 }
 0x33d   : > { %v3462_v41 = vpop.f32.mrb[4].mxu0 }
 0x33e   : > { %1238 = vmax.xlane.f32.xlu1 %v3459_v40  ;;  %v3465_v42 = vpop.f32.mrb[5].mxu0 }
 0x33f   : > { %1242 = vmax.xlane.f32.xlu0 %v3465_v42 }
 0x341   : > { %v3468_v43 = vpop.f32.mrb[6].mxu0 }
 0x342   : > { %1244 = vmax.xlane.f32.xlu1 %v3462_v41  ;;  %v3471_v44 = vpop.f32.mrb[7].mxu0 }
 0x343   : > { %1246 = vmax.xlane.f32.xlu0 %v3471_v44 }
 0x345   : > { %v3474_v45 = vpop.f32.mrb[8].mxu0 }
 0x346   : > { %1248 = vmax.xlane.f32.xlu1 %v3468_v43  ;;  %v3477_v46 = vpop.f32.mrb[9].mxu0 }
 0x347   : > { %1250 = vmax.xlane.f32.xlu0 %v3477_v46 }
 0x349   : > { %v3480_v48 = vpop.f32.mrb[10].mxu0 }
 0x34a   : > { %1252 = vmax.xlane.f32.xlu1 %v3474_v45  ;;  %v3483_v49 = vpop.f32.mrb[11].mxu0 }
 0x34b   : > { %1254 = vmax.xlane.f32.xlu0 %v3483_v49 }
 0x34d   : > { %v3486_v50 = vpop.f32.mrb[12].mxu0 }
 0x34e   : > { %1256 = vmax.xlane.f32.xlu1 %v3480_v48  ;;  %v3489_v51 = vpop.f32.mrb[13].mxu0 }
 0x34f   : > { %1258 = vmax.xlane.f32.xlu0 %v3489_v51 }
 0x351   : > { %v3492_v52 = vpop.f32.mrb[14].mxu0 }
 0x352   : > { %1260 = vmax.xlane.f32.xlu1 %v3486_v50  ;;  %v3495_v53 = vpop.f32.mrb[15].mxu0 }
 0x353   : > { %1262 = vmax.xlane.f32.xlu0 %v3495_v53 }
 0x356   : > { %1264 = vmax.xlane.f32.xlu1 %v3492_v52 }
 0x3c4   : > { %v1235_v3 = vpop.xlane.xlu0 %1234 }
 0x3c5   : > { %v3510_v4 = vmax.f32 %v3507_v2, %v1235_v3 }
 0x3c7   : > { %1860 = vst.msk [vmem:[#allocation4] sm:$0xff] %vm1538_vm5, %v3510_v4  ;;  %v1241_v7 = vpop.xlane.xlu1 %1240  ;;  %1332 = vperm.xlu0 %2801, %v3510_v4   ;;  %v1282_v59 = vsub.f32 %v3507_v2, %v3510_v4 }
 0x3c8   : > { %v3522_v10 = vmax.f32 %v3512_v5, %v1241_v7  ;;  %v1237_v11 = vpop.xlane.xlu0 %1236 }
 0x3c9   : > { %v3525_v13 = vmax.f32 %v3514_v6, %v1237_v11  ;;  %v1298_v3 = vmul.f32 1.442695, %v1282_v59 }
 0x3ca   : > { %1863 = vst.msk [vmem:[#allocation4 + $0x18] sm:$0xff] %vm1538_vm5, %v3522_v10  ;;  %v1285_v2 = vsub.f32 %v3512_v5, %v3522_v10 }
 0x3cb   : > { %1861 = vst.msk [vmem:[#allocation4 + $0x8] sm:$0xff] %vm1538_vm5, %v3525_v13  ;;  %v1239_v16 = vpop.xlane.xlu1 %1238  ;;  %1337 = vperm.xlu1 %2802, %v3525_v13   ;;  %2803 = vpow2.f32 %v1298_v3 }
 0x3cc   : > { %v3539_v19 = vmax.f32 %v3527_v14, %v1239_v16  ;;  %v1243_v20 = vpop.xlane.xlu0 %1242  ;;  %v1304_v16 = vmul.f32 1.442695, %v1285_v2 }
 0x3cd   : > { %v3544_v23 = vmax.f32 %v3531_v15, %v1243_v20  ;;  %v3600_v20 = vld [vmem:[#allocation4 + $0x78] sm:$0xff] }
 0x3ce   : > { %1862 = vst.msk [vmem:[#allocation4 + $0x10] sm:$0xff] %vm1538_vm5, %v3539_v19  ;;  %2805 = vpow2.f32 %v1304_v16 }
 0x3cf   : > { %v1245_v25 = vpop.xlane.xlu1 %1244  ;;  %1347 = vperm.xlu1 %2802, %v3522_v10   ;;  %1864 = vst.msk [vmem:[#allocation4 + $0x20] sm:$0xff] %vm1538_vm5, %v3544_v23  ;;  %v1286_v55 = vsub.f32 %v3531_v15, %v3544_v23 }
 0x3d0   : > { %v1271_v28 = vmax.f32 %v3541_v22, %v1245_v25  ;;  %v1247_v29 = vpop.xlane.xlu0 %1246 }
 0x3d1   : > { %v3559_v32 = vmax.f32 %v3548_v24, %v1247_v29  ;;  %v1306_v59 = vmul.f32 1.442695, %v1286_v55 }
 0x3d2   : > { %1865 = vst.msk [vmem:[#allocation4 + $0x28] sm:$0xff] %vm1538_vm5, %v1271_v28  ;;  %v1287_v5 = vsub.f32 %v3541_v22, %v1271_v28 }
 0x3d3   : > { %v1249_v34 = vpop.xlane.xlu1 %1248  ;;  %1342 = vperm.xlu1 %2802, %v3539_v19   ;;  %1866 = vst.msk [vmem:[#allocation4 + $0x30] sm:$0xff] %vm1538_vm5, %v3559_v32 }
 0x3d4   : > { %v1273_v47 = vmax.f32 %v3556_v31, %v1249_v34  ;;  %v1251_v54 = vpop.xlane.xlu0 %1250  ;;  %v1308_v25 = vmul.f32 1.442695, %v1287_v5 }
 0x3d5   : > { %v3571_v57 = vmax.f32 %v3562_v33, %v1251_v54 }
 0x3d6   : > { %1867 = vst.msk [vmem:[#allocation4 + $0x38] sm:$0xff] %vm1538_vm5, %v1273_v47  ;;  %v1289_v26 = vsub.f32 %v3556_v31, %v1273_v47  ;;  %2807 = vpow2.f32 %v1308_v25 }
 0x3d7   : > { %v1253_v60 = vpop.xlane.xlu1 %1252  ;;  %1357 = vperm.xlu1 %2802, %v1271_v28   ;;  %1868 = vst.msk [vmem:[#allocation4 + $0x40] sm:$0xff] %vm1538_vm5, %v3571_v57  ;;  %v1283_v28 = vsub.f32 %v3514_v6, %v3525_v13  ;;  %v1284_v6 = vsub.f32 %v3527_v14, %v3539_v19  ;;  %v3625_v13 = vpop.eup %2803 }
 0x3d8   : > { %v1275_v61 = vmax.f32 %v1227_v56, %v1253_v60  ;;  %v1255_v62 = vpop.xlane.xlu0 %1254  ;;  %v1312_v31 = vmul.f32 1.442695, %v1289_v26  ;;  %v1288_v60 = vsub.f32 %v3548_v24, %v3559_v32 }
 0x3d9   : > { %v3581_v0 = vmax.f32 %v3574_v58, %v1255_v62  ;;  %v1300_v35 = vmul.f32 1.442695, %v1283_v28  ;;  %v1302_v54 = vmul.f32 1.442695, %v1284_v6  ;;  %v1290_v62 = vsub.f32 %v3562_v33, %v3571_v57 }
 0x3da   : > { %1869 = vst.msk [vmem:[#allocation4 + $0x48] sm:$0xff] %vm1538_vm5, %v1275_v61  ;;  %1377 = vperm.xlu0 %2801, %v1275_v61   ;;  %v1291_v34 = vsub.f32 %v1227_v56, %v1275_v61  ;;  %2809 = vpow2.f32 %v1312_v31  ;;  %v3631_v56 = vpop.eup %2805 }
 0x3db   : > { %v1257_v4 = vpop.xlane.xlu1 %1256  ;;  %1352 = vperm.xlu1 %2802, %v3544_v23   ;;  %1870 = vst.msk [vmem:[#allocation4 + $0x50] sm:$0xff] %vm1538_vm5, %v3581_v0  ;;  %2811 = vpow2.f32 %v1300_v35  ;;  %v1310_v23 = vmul.f32 1.442695, %v1288_v60  ;;  %v1314_v24 = vmul.f32 1.442695, %v1290_v62 }
 0x3dc   : > { %v1277_v7 = vmax.f32 %v1229_v63, %v1257_v4  ;;  %v1259_v8 = vpop.xlane.xlu0 %1258  ;;  %v1316_v36 = vmul.f32 1.442695, %v1291_v34 }
 0x3dd   : > { %v3592_v11 = vmax.f32 %v3584_v1, %v1259_v8 }
 0x3de   : > { %1871 = vst.msk [vmem:[#allocation4 + $0x58] sm:$0xff] %vm1538_vm5, %v1277_v7  ;;  %1387 = vperm.xlu0 %2801, %v1277_v7   ;;  %2813 = vpow2.f32 %v1316_v36 }
 0x3df   : > { %v1261_v10 = vpop.xlane.xlu1 %1260  ;;  %1367 = vperm.xlu1 %2802, %v1273_v47   ;;  %1872 = vst.msk [vmem:[#allocation4 + $0x60] sm:$0xff] %vm1538_vm5, %v3592_v11  ;;  %v1293_v47 = vsub.f32 %v1229_v63, %v1277_v7  ;;  %2815 = vpow2.f32 %v1302_v54 }
 0x3e0   : > { %v1279_v17 = vmax.f32 %v1231_v9, %v1261_v10  ;;  %v1263_v18 = vpop.xlane.xlu0 %1262  ;;  %v3637_v61 = vpop.eup %2807 }
 0x3e1   : > { %v3603_v21 = vmax.f32 %v3595_v12, %v1263_v18  ;;  %v1320_v14 = vmul.f32 1.442695, %v1293_v47 }
 0x3e2   : > { %1873 = vst.msk [vmem:[#allocation4 + $0x68] sm:$0xff] %vm1538_vm5, %v1279_v17  ;;  %1397 = vperm.xlu0 %2801, %v1279_v17   ;;  %v1295_v19 = vsub.f32 %v1231_v9, %v1279_v17 }
 0x3e3   : > { %1362 = vperm.xlu1 %2802, %v3559_v32   ;;  %v1265_v22 = vpop.xlane.xlu1 %1264  ;;  %v1296_v27 = vsub.f32 %v3595_v12, %v3603_v21  ;;  %1874 = vst.msk [vmem:[#allocation4 + $0x70] sm:$0xff] %vm1538_vm5, %v3603_v21  ;;  %2817 = vpow2.f32 %v1320_v14  ;;  %v1292_v32 = vsub.f32 %v3574_v58, %v3581_v0 }
 0x3e4   : > { %v3615_v29 = vmax.f32 %v3600_v20, %v1265_v22  ;;  %v1324_v15 = vmul.f32 1.442695, %v1295_v19  ;;  %2819 = vpow2.f32 %v1306_v59  ;;  %v3643_v63 = vpop.eup %2809 }
 0x3e5   : > { %v3645_v3 = vpop.eup %2811  ;;  %v1318_v33 = vmul.f32 1.442695, %v1292_v32 }
 0x3e6   : > { %v1297_v30 = vsub.f32 %v3600_v20, %v3615_v29  ;;  %1875 = vst.msk [vmem:[#allocation4 + $0x78] sm:$0xff] %vm1538_vm5, %v3615_v29  ;;  %1407 = vperm.xlu0 %2801, %v3615_v29   ;;  %2821 = vpow2.f32 %v1324_v15 }
 0x3e7   : > { %1372 = vperm.xlu1 %2802, %v3571_v57   ;;  %2823 = vpow2.f32 %v1310_v23  ;;  %v1294_v57 = vsub.f32 %v3584_v1, %v3592_v11 }
 0x3e8   : > { %v3651_v2 = vpop.eup %2813  ;;  %2825 = vpow2.f32 %v1314_v24 }
 0x3e9   : > { %v3653_v4 = vpop.eup %2815  ;;  %2827 = vpow2.f32 %v1318_v33  ;;  %v1322_v58 = vmul.f32 1.442695, %v1294_v57 }
 0x3ea   : > { %1573 = vperm.xlu0 %2801, %v3625_v13  }
 0x3eb   : > { %1382 = vperm.xlu1 %2802, %v3581_v0   ;;  %2829 = vpow2.f32 %v1322_v58 }
 0x3ed   : > { %v3659_v7 = vpop.eup %2817 }
 0x3ee   : > { %1588 = vperm.xlu0 %2801, %v3631_v56   ;;  %v3661_v8 = vpop.eup %2819 }
 0x3ef   : > { %1392 = vperm.xlu1 %2802, %v3592_v11  }
 0x3f0   : > { %v3665_v0 = vpop.eup %2821 }
 0x3f1   : > { %v3667_v9 = vpop.eup %2823 }
 0x3f2   : > { %1598 = vperm.xlu0 %2801, %v3637_v61   ;;  %v3671_v1 = vpop.eup %2825 }
 0x3f3   : > { %1402 = vperm.xlu1 %2802, %v3603_v21   ;;  %v3674_v11 = vpop.eup %2827 }
 0x3f5   : > { %v3677_v16 = vpop.eup %2829 }
 0x3f6   : > { %1608 = vperm.xlu0 %2801, %v3643_v63  }
 0x3f7   : > { %1578 = vperm.xlu1 %2802, %v3645_v3  }
 0x3fa   : > { %1618 = vperm.xlu0 %2801, %v3651_v2  }
 0x3fb   : > { %1583 = vperm.xlu1 %2802, %v3653_v4  }
 0x3fe   : > { %1628 = vperm.xlu0 %2801, %v3659_v7  }
 0x3ff   : > { %1593 = vperm.xlu1 %2802, %v3661_v8  }
 0x402   : > { %1638 = vperm.xlu0 %2801, %v3665_v0  }
 0x403   : > { %1603 = vperm.xlu1 %2802, %v3667_v9  }
 0x407   : > { %1613 = vperm.xlu1 %2802, %v3671_v1  }
 0x40b   : > { %1623 = vperm.xlu1 %2802, %v3674_v11  }
 0x40f   : > { %1633 = vperm.xlu1 %2802, %v3677_v16  }
 0x446   : > { %v1333_v5 = vpop.permute.xlu0 %1332 }
 0x447   : > { %v1410_v10 = vsub.f32 %v3453_v38, %v1333_v5 }
 0x449   : > { %v1426_v17 = vmul.f32 1.442695, %v1410_v10 }
 0x44a   : > { %v1338_v18 = vpop.permute.xlu1 %1337 }
 0x44b   : > { %2831 = vpow2.f32 %v1426_v17  ;;  %v1411_v25 = vsub.f32 %v3451_v37, %v1338_v18 }
 0x44d   : > { %v1428_v26 = vmul.f32 1.442695, %v1411_v25 }
 0x44e   : > { %v1348_v22 = vpop.permute.xlu1 %1347 }
 0x44f   : > { %2833 = vpow2.f32 %v1428_v26  ;;  %v1413_v28 = vsub.f32 %v3456_v39, %v1348_v22 }
 0x451   : > { %v1432_v31 = vmul.f32 1.442695, %v1413_v28 }
 0x452   : > { %v1343_v34 = vpop.permute.xlu1 %1342 }
 0x453   : > { %2835 = vpow2.f32 %v1432_v31  ;;  %v1412_v35 = vsub.f32 %v3459_v40, %v1343_v34 }
 0x455   : > { %v2832_v6 = vpop.eup %2831  ;;  %v1430_v36 = vmul.f32 1.442695, %v1412_v35 }
 0x456   : > { %v1358_v47 = vpop.permute.xlu1 %1357  ;;  %1490 = vadd.xlane.f32.xlu1 %v2832_v6  ;;  %2556 = vmatprep.mubr.f32.mxu1 %v2832_v6 }
 0x457   : > { %2837 = vpow2.f32 %v1430_v36  ;;  %v1415_v38 = vsub.f32 %v3462_v41, %v1358_v47 }
 0x459   : > { %v2834_v54 = vpop.eup %2833  ;;  %v1436_v37 = vmul.f32 1.442695, %v1415_v38  ;;  %v1378_v55 = vpop.permute.xlu0 %1377 }
 0x45a   : > { %v1353_v14 = vpop.permute.xlu1 %1352  ;;  %1492 = vadd.xlane.f32.xlu0 %v2834_v54  ;;  %2557 = vmatmul.mubr.f32.vlgmr.msra.gmra.mrb[0].mxu1 %v2834_v54  ;;  %v1419_v23 = vsub.f32 %v3474_v45, %v1378_v55 }
 0x45b   : > { %2839 = vpow2.f32 %v1436_v37  ;;  %v1414_v39 = vsub.f32 %v3465_v42, %v1353_v14 }
 0x45c   : > { %v1444_v42 = vmul.f32 1.442695, %v1419_v23 }
 0x45d   : > { %v2836_v19 = vpop.eup %2835  ;;  %v1434_v59 = vmul.f32 1.442695, %v1414_v39  ;;  %v1388_v40 = vpop.permute.xlu0 %1387 }
 0x45e   : > { %v1368_v60 = vpop.permute.xlu1 %1367  ;;  %1496 = vadd.xlane.f32.xlu1 %v2836_v19  ;;  %v1421_v57 = vsub.f32 %v3480_v48, %v1388_v40 }
 0x45f   : > { %2841 = vpow2.f32 %v1434_v59  ;;  %v1417_v15 = vsub.f32 %v3468_v43, %v1368_v60  ;;  %v1328_v59 = vmul.f32 1.442695, %v1297_v30 }
 0x460   : > { %v1448_v45 = vmul.f32 1.442695, %v1421_v57 }
 0x461   : > { %v2838_v41 = vpop.eup %2837  ;;  %v1440_v62 = vmul.f32 1.442695, %v1417_v15  ;;  %v1398_v32 = vpop.permute.xlu0 %1397 }
 0x462   : > { %v1363_v24 = vpop.permute.xlu1 %1362  ;;  %1494 = vadd.xlane.f32.xlu0 %v2838_v41  ;;  %2559 = vmatprep.mubr.f32.mxu1 %v2838_v41  ;;  %v1423_v17 = vsub.f32 %v3486_v50, %v1398_v32 }
 0x463   : > { %2843 = vpow2.f32 %v1440_v62  ;;  %v1416_v33 = vsub.f32 %v3471_v44, %v1363_v24  ;;  %2560 = vmatmul.mubr.f32.gmra.mrb[2].mxu1 %v2836_v19  ;;  %v1326_v19 = vmul.f32 1.442695, %v1296_v27 }
 0x464   : > { %v1452_v48 = vmul.f32 1.442695, %v1423_v17 }
 0x465   : > { %v2840_v58 = vpop.eup %2839  ;;  %v1438_v5 = vmul.f32 1.442695, %v1416_v33  ;;  %v1408_v25 = vpop.permute.xlu0 %1407 }
 0x466   : > { %v1373_v10 = vpop.permute.xlu1 %1372  ;;  %1500 = vadd.xlane.f32.xlu1 %v2840_v58  ;;  %v1425_v28 = vsub.f32 %v3492_v52, %v1408_v25 }
 0x467   : > { %2845 = vpow2.f32 %v1438_v5  ;;  %v1418_v43 = vsub.f32 %v3477_v46, %v1373_v10  ;;  %v1459_v10 = vld [vmem:[#allocation5 + $0x8] sm:$0xff] }
 0x468   : > { %2847 = vpow2.f32 %v1444_v42  ;;  %v1456_v35 = vmul.f32 1.442695, %v1425_v28  ;;  %v1458_v42 = vld [vmem:[#allocation5] sm:$0xff] }
 0x469   : > { %v2842_v18 = vpop.eup %2841  ;;  %v1442_v26 = vmul.f32 1.442695, %v1418_v43  ;;  %v3710_v12 = vpop.permute.xlu0 %1573  ;;  %v1474_v57 = vmul.f32 %v3625_v13, %v1458_v42  ;;  %v1468_v42 = vld [vmem:[#allocation5 + $0x50] sm:$0xff] }
 0x46a   : > { %v1383_v22 = vpop.permute.xlu1 %1382  ;;  %1498 = vadd.xlane.f32.xlu0 %v2842_v18  ;;  %2562 = vmatprep.mubr.f32.mxu1 %v2842_v18  ;;  %v1461_v18 = vld [vmem:[#allocation5 + $0x18] sm:$0xff] }
 0x46b   : > { %2849 = vpow2.f32 %v1442_v26  ;;  %v1420_v44 = vsub.f32 %v3483_v49, %v1383_v22  ;;  %2563 = vmatmul.mubr.f32.gmra.mrb[4].mxu1 %v2840_v58  ;;  %v1477_v26 = vmul.f32 %v3631_v56, %v1461_v18 }
 0x46c   : > { %2851 = vpow2.f32 %v1448_v45  ;;  %v1475_v45 = vmul.f32 %v3645_v3, %v1459_v10  ;;  %v1484_v10 = vmul.f32 %v3674_v11, %v1468_v42  ;;  %v1472_v11 = vld [vmem:[#allocation5 + $0x70] sm:$0xff] }
 0x46d   : > { %v2844_v31 = vpop.eup %2843  ;;  %v1446_v46 = vmul.f32 1.442695, %v1420_v44  ;;  %v3714_v27 = vpop.permute.xlu0 %1588  ;;  %v1460_v44 = vld [vmem:[#allocation5 + $0x10] sm:$0xff] }
 0x46e   : > { %v1393_v34 = vpop.permute.xlu1 %1392  ;;  %1504 = vadd.xlane.f32.xlu1 %v2844_v31  ;;  %v1476_v13 = vmul.f32 %v3653_v4, %v1460_v44 }
 0x46f   : > { %2853 = vpow2.f32 %v1446_v46  ;;  %v1422_v50 = vsub.f32 %v3489_v51, %v1393_v34 }
 0x470   : > { %2855 = vpow2.f32 %v1452_v48 }
 0x471   : > { %v2846_v6 = vpop.eup %2845  ;;  %v1450_v36 = vmul.f32 1.442695, %v1422_v50  ;;  %v3718_v20 = vpop.permute.xlu0 %1598  ;;  %v1462_v50 = vld [vmem:[#allocation5 + $0x20] sm:$0xff] }
 0x472   : > { %v2848_v47 = vpop.eup %2847  ;;  %1502 = vadd.xlane.f32.xlu0 %v2846_v6  ;;  %v1403_v38 = vpop.permute.xlu1 %1402  ;;  %2565 = vmatprep.mubr.f32.mxu1 %v2846_v6  ;;  %v1478_v56 = vmul.f32 %v3661_v8, %v1462_v50 }
 0x473   : > { %2857 = vpow2.f32 %v1450_v36  ;;  %v1424_v49 = vsub.f32 %v3495_v53, %v1403_v38  ;;  %1508 = vadd.xlane.f32.xlu1 %v2848_v47  ;;  %2566 = vmatmul.mubr.f32.gmra.mrb[6].mxu1 %v2844_v31  ;;  %v1463_v31 = vld [vmem:[#allocation5 + $0x28] sm:$0xff]  ;;  %v1465_v36 = vld [vmem:[#allocation5 + $0x38] sm:$0xff] }
 0x474   : > { %2859 = vpow2.f32 %v1456_v35  ;;  %v1479_v3 = vmul.f32 %v3637_v61, %v1463_v31  ;;  %v1481_v4 = vmul.f32 %v3643_v63, %v1465_v36  ;;  %v1558_v36 = vld [vmem:[#allocation6 + $0x18] sm:$0xff] }
 0x475   : > { %v2850_v52 = vpop.eup %2849  ;;  %v1454_v54 = vmul.f32 1.442695, %v1424_v49  ;;  %v3722_v30 = vpop.permute.xlu0 %1608  ;;  %v1464_v49 = vld [vmem:[#allocation5 + $0x30] sm:$0xff] }
 0x476   : > { %v2852_v37 = vpop.eup %2851  ;;  %1506 = vadd.xlane.f32.xlu0 %v2850_v52  ;;  %2568 = vmatprep.mubr.f32.mxu1 %v2850_v52  ;;  %v3708_v15 = vpop.permute.xlu1 %1578  ;;  %v1480_v61 = vmul.f32 %v3667_v9, %v1464_v49 }
 0x477   : > { %2861 = vpow2.f32 %v1454_v54  ;;  %1512 = vadd.xlane.f32.xlu1 %v2852_v37  ;;  %2569 = vmatmul.mubr.f32.gmra.mrb[8].mxu1 %v2848_v47  ;;  %v1467_v54 = vld [vmem:[#allocation5 + $0x48] sm:$0xff] }
 0x478   : > { %2863 = vpow2.f32 %v1326_v19 }
 0x479   : > { %v2854_v51 = vpop.eup %2853  ;;  %2865 = vpow2.f32 %v1328_v59  ;;  %v3726_v62 = vpop.permute.xlu0 %1618 }
 0x47a   : > { %v2856_v55 = vpop.eup %2855  ;;  %1510 = vadd.xlane.f32.xlu0 %v2854_v51  ;;  %2571 = vmatprep.mubr.f32.mxu1 %v2854_v51  ;;  %v3712_v21 = vpop.permute.xlu1 %1583 }
 0x47b   : > { %1516 = vadd.xlane.f32.xlu1 %v2856_v55  ;;  %2572 = vmatmul.mubr.f32.gmra.mrb[10].mxu1 %v2852_v37  ;;  %v1483_v37 = vmul.f32 %v3651_v2, %v1467_v54 }
 0x47d   : > { %v2858_v14 = vpop.eup %2857  ;;  %v3730_v32 = vpop.permute.xlu0 %1628 }
 0x47e   : > { %v2860_v39 = vpop.eup %2859  ;;  %1514 = vadd.xlane.f32.xlu0 %v2858_v14  ;;  %2574 = vmatprep.mubr.f32.mxu1 %v2858_v14  ;;  %v3716_v23 = vpop.permute.xlu1 %1593 }
 0x47f   : > { %1520 = vadd.xlane.f32.xlu1 %v2860_v39  ;;  %2575 = vmatmul.mubr.f32.gmra.mrb[12].mxu1 %v2856_v55  ;;  %v1466_v55 = vld [vmem:[#allocation5 + $0x40] sm:$0xff] }
 0x480   : > { %v1482_v63 = vmul.f32 %v3671_v1, %v1466_v55  ;;  %v1470_v1 = vld [vmem:[#allocation5 + $0x60] sm:$0xff] }
 0x481   : > { %v2862_v53 = vpop.eup %2861  ;;  %v3735_v58 = vpop.permute.xlu0 %1638 }
 0x482   : > { %1518 = vadd.xlane.f32.xlu0 %v2862_v53  ;;  %2577 = vmatprep.mubr.f32.mxu1 %v2862_v53  ;;  %v3702_v40 = vpop.eup %2863  ;;  %v3720_v29 = vpop.permute.xlu1 %1603 }
 0x483   : > { %2578 = vmatmul.mubr.f32.gmra.mrb[14].mxu1 %v2860_v39  ;;  %v3705_v60 = vpop.eup %2865  ;;  %v1469_v39 = vld [vmem:[#allocation5 + $0x58] sm:$0xff] }
 0x484   : > { %v1485_v19 = vmul.f32 %v3659_v7, %v1469_v39 }
 0x486   : > { %v3724_v41 = vpop.permute.xlu1 %1613 }
 0x48a   : > { %v3728_v24 = vpop.permute.xlu1 %1623 }
 0x48e   : > { %v3732_v33 = vpop.permute.xlu1 %1633 }
 0x490   : > { %1643 = vperm.xlu1 %2802, %v3702_v40  }
 0x498   : > { %1648 = vperm.xlu0 %2801, %v3705_v60  }
 0x4e3   : > { %v1491_v5 = vpop.xlane.xlu1 %1490 }
 0x4e4   : > { %v1522_v43 = vadd.f32 %v1491_v5, %v1474_v57  ;;  %v1471_v5 = vld [vmem:[#allocation5 + $0x68] sm:$0xff] }
 0x4e6   : > { %1539 = vst.msk [vmem:[#allocation5] sm:$0xff] %vm1538_vm5, %v1522_v43  ;;  %v1487_v43 = vmul.f32 %v3665_v0, %v1471_v5  ;;  %v1488_v0 = vmul.f32 %v3702_v40, %v1472_v11  ;;  %v1557_v40 = vld [vmem:[#allocation6 + $0x10] sm:$0xff] }
 0x4e7   : > { %v1493_v17 = vpop.xlane.xlu0 %1492 }
 0x4e8   : > { %v1523_v25 = vadd.f32 %v1493_v17, %v1475_v45 }
 0x4ea   : > { %1540 = vst.msk [vmem:[#allocation5 + $0x8] sm:$0xff] %vm1538_vm5, %v1523_v25  ;;  %v1473_v25 = vld [vmem:[#allocation5 + $0x78] sm:$0xff] }
 0x4eb   : > { %v1497_v22 = vpop.xlane.xlu1 %1496 }
 0x4ec   : > { %v1525_v48 = vadd.f32 %v1497_v22, %v1477_v26  ;;  %v1486_v26 = vmul.f32 %v3677_v16, %v1470_v1  ;;  %v1489_v22 = vmul.f32 %v3705_v60, %v1473_v25  ;;  %v1556_v16 = vld [vmem:[#allocation6 + $0x8] sm:$0xff]  ;;  %v1567_v25 = vld [vmem:[#allocation6 + $0x60] sm:$0xff] }
 0x4ee   : > { %1542 = vst.msk [vmem:[#allocation5 + $0x18] sm:$0xff] %vm1538_vm5, %v1525_v48 }
 0x4ef   : > { %v1495_v28 = vpop.xlane.xlu0 %1494 }
 0x4f0   : > { %v1524_v46 = vadd.f32 %v1495_v28, %v1476_v13 }
 0x4f2   : > { %1541 = vst.msk [vmem:[#allocation5 + $0x10] sm:$0xff] %vm1538_vm5, %v1524_v46 }
 0x4f3   : > { %v1501_v34 = vpop.xlane.xlu1 %1500 }
 0x4f4   : > { %v1527_v35 = vadd.f32 %v1501_v34, %v1479_v3  ;;  %v1555_v3 = vld [vmem:[#allocation6] sm:$0xff]  ;;  %v1652_v34 = vmul.f32 %v3708_v15, %v1556_v16  ;;  %v1560_v15 = vld [vmem:[#allocation6 + $0x28] sm:$0xff] }
 0x4f5   : > { %v1651_v60 = vmul.f32 %v3710_v12, %v1555_v3  ;;  %v1559_v12 = vld [vmem:[#allocation6 + $0x20] sm:$0xff] }
 0x4f6   : > { %1544 = vst.msk [vmem:[#allocation5 + $0x28] sm:$0xff] %vm1538_vm5, %v1527_v35 }
 0x4f7   : > { %v1499_v6 = vpop.xlane.xlu0 %1498 }
 0x4f8   : > { %v1526_v47 = vadd.f32 %v1499_v6, %v1478_v56 }
 0x4fa   : > { %1543 = vst.msk [vmem:[#allocation5 + $0x20] sm:$0xff] %vm1538_vm5, %v1526_v47  ;;  %v1654_v47 = vmul.f32 %v3714_v27, %v1558_v36  ;;  %v1562_v27 = vld [vmem:[#allocation6 + $0x38] sm:$0xff] }
 0x4fb   : > { %v1505_v38 = vpop.xlane.xlu1 %1504  ;;  %v1658_v39 = vmul.f32 %v3722_v30, %v1562_v27 }
 0x4fc   : > { %v1529_v52 = vadd.f32 %v1505_v38, %v1481_v4  ;;  %v1653_v4 = vmul.f32 %v3712_v21, %v1557_v40  ;;  %v1561_v21 = vld [vmem:[#allocation6 + $0x30] sm:$0xff] }
 0x4fe   : > { %1546 = vst.msk [vmem:[#allocation5 + $0x38] sm:$0xff] %vm1538_vm5, %v1529_v52 }
 0x4ff   : > { %v1503_v51 = vpop.xlane.xlu0 %1502 }
 0x500   : > { %v1509_v8 = vpop.xlane.xlu1 %1508  ;;  %v1528_v14 = vadd.f32 %v1503_v51, %v1480_v61  ;;  %v1656_v61 = vmul.f32 %v3718_v20, %v1560_v15 }
 0x501   : > { %v1531_v53 = vadd.f32 %v1509_v8, %v1483_v37  ;;  %v1655_v37 = vmul.f32 %v3716_v23, %v1559_v12  ;;  %v1884_v36 = vld [vmem:[#allocation5 + $0x20] sm:$0xff] (!%p2269_p8) }
 0x502   : > { %1545 = vst.msk [vmem:[#allocation5 + $0x30] sm:$0xff] %vm1538_vm5, %v1528_v14 }
 0x503   : > { %1548 = vst.msk [vmem:[#allocation5 + $0x48] sm:$0xff] %vm1538_vm5, %v1531_v53  ;;  %v1507_v59 = vpop.xlane.xlu0 %1506  ;;  %v1564_v53 = vld [vmem:[#allocation6 + $0x48] sm:$0xff] }
 0x504   : > { %v1513_v57 = vpop.xlane.xlu1 %1512  ;;  %v1530_v9 = vadd.f32 %v1507_v59, %v1482_v63  ;;  %v1657_v63 = vmul.f32 %v3720_v29, %v1561_v21  ;;  %v1563_v59 = vld [vmem:[#allocation6 + $0x40] sm:$0xff]  ;;  %v1660_v23 = vmul.f32 %v3726_v62, %v1564_v53  ;;  %v1568_v29 = vld [vmem:[#allocation6 + $0x68] sm:$0xff] }
 0x505   : > { %v1533_v2 = vadd.f32 %v1513_v57, %v1485_v19  ;;  %v1659_v5 = vmul.f32 %v3724_v41, %v1563_v59  ;;  %v1664_v41 = vmul.f32 %v3735_v58, %v1568_v29  ;;  %v1887_v40 = vld [vmem:[#allocation5 + $0x38] sm:$0xff] (!%p2269_p8) }
 0x506   : > { %1547 = vst.msk [vmem:[#allocation5 + $0x40] sm:$0xff] %vm1538_vm5, %v1530_v9  ;;  %v1566_v9 = vld [vmem:[#allocation6 + $0x58] sm:$0xff] }
 0x507   : > { %1550 = vst.msk [vmem:[#allocation5 + $0x58] sm:$0xff] %vm1538_vm5, %v1533_v2  ;;  %v1511_v45 = vpop.xlane.xlu0 %1510  ;;  %v1662_v1 = vmul.f32 %v3730_v32, %v1566_v9  ;;  %v1569_v32 = vld [vmem:[#allocation6 + $0x70] sm:$0xff] }
 0x508   : > { %v1517_v17 = vpop.xlane.xlu1 %1516  ;;  %v1532_v18 = vadd.f32 %v1511_v45, %v1484_v10  ;;  %v1565_v10 = vld [vmem:[#allocation6 + $0x50] sm:$0xff] }
 0x509   : > { %v1535_v7 = vadd.f32 %v1517_v17, %v1487_v43  ;;  %v1661_v17 = vmul.f32 %v3728_v24, %v1565_v10 }
 0x50a   : > { %1549 = vst.msk [vmem:[#allocation5 + $0x50] sm:$0xff] %vm1538_vm5, %v1532_v18 }
 0x50b   : > { %1552 = vst.msk [vmem:[#allocation5 + $0x68] sm:$0xff] %vm1538_vm5, %v1535_v7  ;;  %v1515_v44 = vpop.xlane.xlu0 %1514 }
 0x50c   : > { %v1521_v48 = vpop.xlane.xlu1 %1520  ;;  %v1534_v13 = vadd.f32 %v1515_v44, %v1486_v26  ;;  %v1570_v44 = vld [vmem:[#allocation6 + $0x78] sm:$0xff] }
 0x50d   : > { %v1537_v28 = vadd.f32 %v1521_v48, %v1489_v22  ;;  %v1663_v22 = vmul.f32 %v3732_v33, %v1567_v25  ;;  %v1882_v33 = vld [vmem:[#allocation5 + $0x10] sm:$0xff] (!%p2269_p8) }
 0x50e   : > { %1551 = vst.msk [vmem:[#allocation5 + $0x60] sm:$0xff] %vm1538_vm5, %v1534_v13  ;;  %2869 = vrcp.f32 (!%p2269_p8), %v1882_v33  ;;  %v1891_v12 = vld [vmem:[#allocation5 + $0x58] sm:$0xff] (!%p2269_p8) }
 0x50f   : > { %1554 = vst.msk [vmem:[#allocation5 + $0x78] sm:$0xff] %vm1538_vm5, %v1537_v28  ;;  %v1519_v31 = vpop.xlane.xlu0 %1518 }
 0x510   : > { %v1536_v46 = vadd.f32 %v1519_v31, %v1488_v0  ;;  %v1644_v13 = vpop.permute.xlu1 %1643 }
 0x512   : > { %1553 = vst.msk [vmem:[#allocation5 + $0x70] sm:$0xff] %vm1538_vm5, %v1536_v46  ;;  %v1665_v46 = vmul.f32 %v1644_v13, %v1569_v32 }
 0x516   : > { %v1895_v21 = vld [vmem:[#allocation5 + $0x78] sm:$0xff] (!%p2269_p8) }
 0x517   : > { %v1649_v11 = vpop.permute.xlu0 %1648 }
 0x518   : > { %v1666_v31 = vmul.f32 %v1649_v11, %v1570_v44 }
 0x519   : > { %v1894_v53 = vld [vmem:[#allocation5 + $0x70] sm:$0xff] (!%p2269_p8) }
 0x52d   : > { %v2558_v50 = vpop.f32.mrb[0].mxu1 }
 0x52e   : > { %v1829_v35 = vadd.f32 %v2558_v50, %v1652_v34  ;;  %v1749_v56 = vpop.f32.mrb[1].mxu1  ;;  %v1883_v50 = vld [vmem:[#allocation5 + $0x18] sm:$0xff] (!%p2269_p8) }
 0x52f   : > { %v1828_v6 = vadd.f32 %v1749_v56, %v1651_v60  ;;  %v1880_v60 = vld [vmem:[#allocation5] sm:$0xff] (!%p2269_p8)  ;;  %v1881_v56 = vld [vmem:[#allocation5 + $0x8] sm:$0xff] (!%p2269_p8) }
 0x530   : > { %1845 = vst [vmem:[#allocation6 + $0x8] sm:$0xff] %v1829_v35  ;;  %v3016_v35 = vmov (!%p2269_p8), 0   ;;  %2871 = vrcp.f32 (!%p2269_p8), %v1880_v60 }
 0x531   : > { %1844 = vst [vmem:[#allocation6] sm:$0xff] %v1828_v6  ;;  %2868 = vset.pattern.permute.xlu1 (!%p2269_p8), %v3016_v35  ;;  %2867 = vset.pattern.permute.xlu0 (!%p2269_p8), %v3016_v35  ;;  %2873 = vrcp.f32 (!%p2269_p8), %v1883_v50  ;;  %v1885_v6 = vld [vmem:[#allocation5 + $0x28] sm:$0xff] (!%p2269_p8) }
 0x532   : > { %2875 = vrcp.f32 (!%p2269_p8), %v1881_v56 }
 0x533   : > { %2877 = vrcp.f32 (!%p2269_p8), %v1885_v6 }
 0x534   : > { %2879 = vrcp.f32 (!%p2269_p8), %v1884_v36 }
 0x535   : > { %2881 = vrcp.f32 (!%p2269_p8), %v1887_v40 }
 0x536   : > { %v2561_v38 = vpop.f32.mrb[2].mxu1 }
 0x537   : > { %v1831_v49 = vadd.f32 %v2561_v38, %v1654_v47  ;;  %v1759_v52 = vpop.f32.mrb[3].mxu1  ;;  %v1886_v47 = vld [vmem:[#allocation5 + $0x30] sm:$0xff] (!%p2269_p8) }
 0x538   : > { %v1830_v54 = vadd.f32 %v1759_v52, %v1653_v4  ;;  %v2870_v4 = vpop.eup (!%p2269_p8), %2869  ;;  %2883 = vrcp.f32 (!%p2269_p8), %v1886_v47 }
 0x539   : > { %1847 = vst [vmem:[#allocation6 + $0x18] sm:$0xff] %v1831_v49  ;;  %1940 = vperm.xlu1 (!%p2269_p8), %2868, %v2870_v4   ;;  %v1889_v49 = vld [vmem:[#allocation5 + $0x48] sm:$0xff] (!%p2269_p8) }
 0x53a   : > { %1846 = vst [vmem:[#allocation6 + $0x10] sm:$0xff] %v1830_v54  ;;  %v2872_v38 = vpop.eup (!%p2269_p8), %2871  ;;  %v1888_v54 = vld [vmem:[#allocation5 + $0x40] sm:$0xff] (!%p2269_p8)  ;;  %2885 = vrcp.f32 (!%p2269_p8), %v1889_v49 }
 0x53b   : > { %v2874_v52 = vpop.eup (!%p2269_p8), %2873  ;;  %1930 = vperm.xlu0 (!%p2269_p8), %2867, %v2872_v38   ;;  %2887 = vrcp.f32 (!%p2269_p8), %v1888_v54 }
 0x53c   : > { %v2876_v15 = vpop.eup (!%p2269_p8), %2875  ;;  %2889 = vrcp.f32 (!%p2269_p8), %v1891_v12 }
 0x53d   : > { %1945 = vperm.xlu1 (!%p2269_p8), %2868, %v2874_v52  }
 0x53e   : > { %v2564_v51 = vpop.f32.mrb[4].mxu1 }
 0x53f   : > { %v1833_v55 = vadd.f32 %v2564_v51, %v1656_v61  ;;  %v1769_v8 = vpop.f32.mrb[5].mxu1  ;;  %v2878_v61 = vpop.eup (!%p2269_p8), %2877  ;;  %1935 = vperm.xlu0 (!%p2269_p8), %2867, %v2876_v15  }
 0x540   : > { %v1832_v14 = vadd.f32 %v1769_v8, %v1655_v37  ;;  %v1890_v37 = vld [vmem:[#allocation5 + $0x50] sm:$0xff] (!%p2269_p8)  ;;  %v2880_v51 = vpop.eup (!%p2269_p8), %2879 }
 0x541   : > { %1849 = vst [vmem:[#allocation6 + $0x28] sm:$0xff] %v1833_v55  ;;  %1955 = vperm.xlu1 (!%p2269_p8), %2868, %v2878_v61   ;;  %2891 = vrcp.f32 (!%p2269_p8), %v1890_v37  ;;  %v1893_v55 = vld [vmem:[#allocation5 + $0x68] sm:$0xff] (!%p2269_p8)  ;;  %v2882_v8 = vpop.eup (!%p2269_p8), %2881  ;;  %v1914_v9 = vld [vmem:[#allocation6 + $0x10] sm:$0xff] (!%p2269_p8) }
 0x542   : > { %1848 = vst [vmem:[#allocation6 + $0x20] sm:$0xff] %v1832_v14  ;;  %v1892_v14 = vld [vmem:[#allocation5 + $0x60] sm:$0xff] (!%p2269_p8)  ;;  %v2884_v27 = vpop.eup (!%p2269_p8), %2883  ;;  %2893 = vrcp.f32 (!%p2269_p8), %v1893_v55 }
 0x543   : > { %1950 = vperm.xlu0 (!%p2269_p8), %2867, %v2880_v51   ;;  %2895 = vrcp.f32 (!%p2269_p8), %v1892_v14 }
 0x544   : > { %2897 = vrcp.f32 (!%p2269_p8), %v1895_v21 }
 0x545   : > { %1965 = vperm.xlu1 (!%p2269_p8), %2868, %v2882_v8   ;;  %2899 = vrcp.f32 (!%p2269_p8), %v1894_v53 }
 0x546   : > { %v2567_v19 = vpop.f32.mrb[6].mxu1 }
 0x547   : > { %v1835_v42 = vadd.f32 %v2567_v19, %v1658_v39  ;;  %v1779_v57 = vpop.f32.mrb[7].mxu1  ;;  %v2886_v39 = vpop.eup (!%p2269_p8), %2885  ;;  %1960 = vperm.xlu0 (!%p2269_p8), %2867, %v2884_v27  }
 0x548   : > { %v1834_v20 = vadd.f32 %v1779_v57, %v1657_v63  ;;  %v2888_v63 = vpop.eup (!%p2269_p8), %2887 }
 0x549   : > { %1851 = vst [vmem:[#allocation6 + $0x38] sm:$0xff] %v1835_v42  ;;  %1975 = vperm.xlu1 (!%p2269_p8), %2868, %v2886_v39   ;;  %v2890_v19 = vpop.eup (!%p2269_p8), %2889 }
 0x54a   : > { %1850 = vst [vmem:[#allocation6 + $0x30] sm:$0xff] %v1834_v20  ;;  %v2570_v2 = vpop.f32.mrb[8].mxu1 }
 0x54b   : > { %v1837_v43 = vadd.f32 %v2570_v2, %v1660_v23  ;;  %v1789_v45 = vpop.f32.mrb[9].mxu1  ;;  %1970 = vperm.xlu0 (!%p2269_p8), %2867, %v2888_v63   ;;  %v2892_v59 = vpop.eup (!%p2269_p8), %2891 }
 0x54c   : > { %v1836_v30 = vadd.f32 %v1789_v45, %v1659_v5  ;;  %v2894_v42 = vpop.eup (!%p2269_p8), %2893  ;;  %v1912_v5 = vld [vmem:[#allocation6] sm:$0xff] (!%p2269_p8) }
 0x54d   : > { %1853 = vst [vmem:[#allocation6 + $0x48] sm:$0xff] %v1837_v43  ;;  %1985 = vperm.xlu1 (!%p2269_p8), %2868, %v2890_v19   ;;  %v2896_v57 = vpop.eup (!%p2269_p8), %2895 }
 0x54e   : > { %1852 = vst [vmem:[#allocation6 + $0x40] sm:$0xff] %v1836_v30  ;;  %v2573_v18 = vpop.f32.mrb[10].mxu1  ;;  %v2898_v20 = vpop.eup (!%p2269_p8), %2897  ;;  %v1915_v30 = vld [vmem:[#allocation6 + $0x18] sm:$0xff] (!%p2269_p8) }
 0x54f   : > { %v1839_v62 = vadd.f32 %v2573_v18, %v1662_v1  ;;  %v1799_v7 = vpop.f32.mrb[11].mxu1  ;;  %1980 = vperm.xlu0 (!%p2269_p8), %2867, %v2892_v59   ;;  %v2900_v23 = vpop.eup (!%p2269_p8), %2899  ;;  %v1913_v1 = vld [vmem:[#allocation6 + $0x8] sm:$0xff] (!%p2269_p8) }
 0x550   : > { %v1838_v26 = vadd.f32 %v1799_v7, %v1661_v17  ;;  %v1916_v7 = vld [vmem:[#allocation6 + $0x20] sm:$0xff] (!%p2269_p8)  ;;  %v1919_v11 = vld [vmem:[#allocation6 + $0x38] sm:$0xff] (!%p2269_p8) }
 0x551   : > { %1855 = vst [vmem:[#allocation6 + $0x58] sm:$0xff] %v1839_v62  ;;  %1995 = vperm.xlu1 (!%p2269_p8), %2868, %v2894_v42   ;;  %v1917_v62 = vld [vmem:[#allocation6 + $0x28] sm:$0xff] (!%p2269_p8) }
 0x552   : > { %1854 = vst [vmem:[#allocation6 + $0x50] sm:$0xff] %v1838_v26  ;;  %v2576_v48 = vpop.f32.mrb[12].mxu1 }
 0x553   : > { %v1841_v28 = vadd.f32 %v2576_v48, %v1664_v41  ;;  %v1809_v0 = vpop.f32.mrb[13].mxu1  ;;  %1990 = vperm.xlu0 (!%p2269_p8), %2867, %v2896_v57   ;;  %v1918_v48 = vld [vmem:[#allocation6 + $0x30] sm:$0xff] (!%p2269_p8) }
 0x554   : > { %v1840_v24 = vadd.f32 %v1809_v0, %v1663_v22  ;;  %1879 = sbr.rel (%p2269_p8) target bundleno = 1498 (0x5da), region = 60 }
 0x555   : > { %1857 = vst [vmem:[#allocation6 + $0x68] sm:$0xff] %v1841_v28  ;;  %2005 = vperm.xlu1 (!%p2269_p8), %2868, %v2898_v20  }
 0x556   : > { %1856 = vst [vmem:[#allocation6 + $0x60] sm:$0xff] %v1840_v24  ;;  %v2579_v16 = vpop.f32.mrb[14].mxu1  ;;  %v1921_v24 = vld [vmem:[#allocation6 + $0x48] sm:$0xff] (!%p2269_p8) }
 0x557   : > { %v1843_v3 = vadd.f32 %v2579_v16, %v1666_v31  ;;  %v1819_v34 = vpop.f32.mrb[15].mxu1  ;;  %2000 = vperm.xlu0 (!%p2269_p8), %2867, %v2900_v23   ;;  %v1920_v31 = vld [vmem:[#allocation6 + $0x40] sm:$0xff] (!%p2269_p8) }
 0x558   : > { %v1842_v58 = vadd.f32 %v1819_v34, %v1665_v46 }
 0x559   : > { %1859 = vst [vmem:[#allocation6 + $0x78] sm:$0xff] %v1843_v3  ;;  %v1922_v33 = vld [vmem:[#allocation6 + $0x50] sm:$0xff] (!%p2269_p8) }
 0x55a   : > { %1858 = vst [vmem:[#allocation6 + $0x70] sm:$0xff] %v1842_v58  ;;  %v1923_v58 = vld [vmem:[#allocation6 + $0x58] sm:$0xff] (!%p2269_p8) }
 0x55c   : > { %v1925_v6 = vld [vmem:[#allocation6 + $0x68] sm:$0xff] }
 0x55d   : > { %v1924_v36 = vld [vmem:[#allocation6 + $0x60] sm:$0xff] }
 0x560   : > { %v1927_v49 = vld [vmem:[#allocation6 + $0x78] sm:$0xff] }
 0x561   : > { %v1926_v52 = vld [vmem:[#allocation6 + $0x70] sm:$0xff] }
 0x5b8   : > { %v1941_v2 = vpop.permute.xlu1 %1940 }
 0x5b9   : > { %v2010_v10 = vmul.f32 %v1941_v2, %v1914_v9 }
 0x5ba   : > { %v1931_v43 = vpop.permute.xlu0 %1930 }
 0x5bb   : > { %v2008_v45 = vmul.f32 %v1931_v43, %v1912_v5  ;;  %2026 = vst [vmem:[%s3173_s13 + $0x10] sm:$0xff] %v2010_v10 }
 0x5bc   : > { %v1946_v29 = vpop.permute.xlu1 %1945 }
 0x5bd   : > { %2024 = vst [vmem:[%s3173_s13] sm:$0xff] %v2008_v45  ;;  %v2011_v17 = vmul.f32 %v1946_v29, %v1915_v30 }
 0x5be   : > { %v1936_v18 = vpop.permute.xlu0 %1935 }
 0x5bf   : > { %v2009_v25 = vmul.f32 %v1936_v18, %v1913_v1  ;;  %2027 = vst [vmem:[%s3173_s13 + $0x18] sm:$0xff] %v2011_v17 }
 0x5c0   : > { %v1956_v26 = vpop.permute.xlu1 %1955 }
 0x5c1   : > { %2025 = vst [vmem:[%s3173_s13 + $0x8] sm:$0xff] %v2009_v25  ;;  %v2013_v41 = vmul.f32 %v1956_v26, %v1917_v62 }
 0x5c2   : > { %v1951_v22 = vpop.permute.xlu0 %1950 }
 0x5c3   : > { %v2012_v44 = vmul.f32 %v1951_v22, %v1916_v7  ;;  %2029 = vst [vmem:[%s3173_s13 + $0x28] sm:$0xff] %v2013_v41 }
 0x5c4   : > { %v1966_v32 = vpop.permute.xlu1 %1965 }
 0x5c5   : > { %2028 = vst [vmem:[%s3173_s13 + $0x20] sm:$0xff] %v2012_v44  ;;  %v2015_v13 = vmul.f32 %v1966_v32, %v1919_v11 }
 0x5c6   : > { %v1961_v28 = vpop.permute.xlu0 %1960 }
 0x5c7   : > { %v2014_v0 = vmul.f32 %v1961_v28, %v1918_v48  ;;  %2031 = vst [vmem:[%s3173_s13 + $0x38] sm:$0xff] %v2015_v13 }
 0x5c8   : > { %v1976_v46 = vpop.permute.xlu1 %1975 }
 0x5c9   : > { %2030 = vst [vmem:[%s3173_s13 + $0x30] sm:$0xff] %v2014_v0  ;;  %v2017_v16 = vmul.f32 %v1976_v46, %v1921_v24 }
 0x5ca   : > { %v1971_v3 = vpop.permute.xlu0 %1970 }
 0x5cb   : > { %v2016_v34 = vmul.f32 %v1971_v3, %v1920_v31  ;;  %2033 = vst [vmem:[%s3173_s13 + $0x48] sm:$0xff] %v2017_v16 }
 0x5cc   : > { %v1986_v60 = vpop.permute.xlu1 %1985 }
 0x5cd   : > { %2032 = vst [vmem:[%s3173_s13 + $0x40] sm:$0xff] %v2016_v34  ;;  %v2019_v50 = vmul.f32 %v1986_v60, %v1923_v58 }
 0x5ce   : > { %v1981_v35 = vpop.permute.xlu0 %1980 }
 0x5cf   : > { %v2018_v56 = vmul.f32 %v1981_v35, %v1922_v33  ;;  %2035 = vst [vmem:[%s3173_s13 + $0x58] sm:$0xff] %v2019_v50 }
 0x5d0   : > { %v1996_v40 = vpop.permute.xlu1 %1995 }
 0x5d1   : > { %2034 = vst [vmem:[%s3173_s13 + $0x50] sm:$0xff] %v2018_v56  ;;  %v2021_v47 = vmul.f32 %v1996_v40, %v1925_v6 }
 0x5d2   : > { %v1991_v4 = vpop.permute.xlu0 %1990 }
 0x5d3   : > { %v2020_v38 = vmul.f32 %v1991_v4, %v1924_v36  ;;  %2037 = vst [vmem:[%s3173_s13 + $0x68] sm:$0xff] %v2021_v47 }
 0x5d4   : > { %v2006_v54 = vpop.permute.xlu1 %2005 }
 0x5d5   : > { %2036 = vst [vmem:[%s3173_s13 + $0x60] sm:$0xff] %v2020_v38  ;;  %v2023_v15 = vmul.f32 %v2006_v54, %v1927_v49 }
 0x5d6   : > { %v2001_v12 = vpop.permute.xlu0 %2000 }
 0x5d7   : > { %v2022_v61 = vmul.f32 %v2001_v12, %v1926_v52  ;;  %2039 = vst [vmem:[%s3173_s13 + $0x78] sm:$0xff] %v2023_v15 }
 0x5d9   : > { %2038 = vst [vmem:[%s3173_s13 + $0x70] sm:$0xff] %v2022_v61 }
 0x5da PF: > { %s2272_s27 = sshll.u32 %s2995_s29, 5  ;;  %s2056_s22 = sshll.u32 %s3173_s13, 4  ;;  %s3802_s22 = int_to_ptr.vmem [resolvable:$true] %s2056_s22 }
 0x5db   : > { %s2053_s18 = sadd.s32 %s2272_s27, %s3147_s11  ;;  %s3905_s20 = sld [smem:[#allocation21_spill]] }
 0x5dc   : > { %s2273_s23 = sshll.u32 %s2053_s18, 7  ;;  %s3906_s21 = sand.u32 1, %s2979_s25  }
 0x5dd   : > { %s3811_s30 = scalar_lea.sflag [#allocation8], %s3906_s21  ;;  %s2901_s14 = scalar_lea.vmem %s3802_s22, 2048 }
 0x5de   : > { %p2902_p9 = scmp.ne.s32.totalorder %s3802_s22, %s2901_s14  ;;  %s3017_s29 = smov [#allocation7]  }
 0x5df   : > { %s2905_s11 = sshll.u32 %s3017_s29, 4  ;;  %s2906_s11 = int_to_ptr.vmem [resolvable:$false] %s2905_s11 }
 0x5e0   : > { %p2903_p10 = pnand %p2902_p9, %p3122_p6  ;;  %s2907_s13 = scalar_lea.vmem %s2906_s11, 4096 }
 0x5e1   : > { %s3807_s19 = scalar_lea.hbm %s3905_s20, %s2273_s23  ;;  %p2908_p12 = scmp.lt.s32.totalorder %s3802_s22, %s2906_s11 }
 0x5e2   : > { %p2904_p11 = pneg %p2903_p10  ;;  %p2909_p13 = scmp.lt.s32.totalorder %s2907_s13, %s2901_s14 }
 0x5e4   : > { %p2910_p0 = por %p2909_p13, %p2908_p12 }
 0x5e6   : > { %p2911_p1 = pnand %p2910_p0, %p2904_p11 }
 0x5e8   : > { %2914 = shalt.err (!%p2911_p1)
}
 0x5e9   : > { %s2915_s8 = scalar_lea.hbm %s3807_s19, 2048  ;;  %s2919_s15 = scalar_lea.hbm %s3905_s20, 8192 }
 0x5ea   : > { %p2916_p2 = scmp.ne.s32.totalorder %s3807_s19, %s2915_s8  ;;  %p2920_p5 = scmp.lt.u32.totalorder %s3807_s19, %s3905_s20 }
 0x5eb   : > { %p2921_p8 = scmp.lt.u32.totalorder %s2919_s15, %s2915_s8  ;;  %p2923_p10 = scmp.lt.u32.totalorder %s2915_s8, %s3807_s19 }
 0x5ec   : > { %p2917_p3 = pnand %p2916_p2, %p3122_p6 }
 0x5ed   : > { %p2922_p9 = por %p2921_p8, %p2920_p5 }
 0x5ee   : > { %p2918_p4 = pneg %p2917_p3 }
 0x5ef   : > { %p2924_p11 = por %p2923_p10, %p2922_p9 }
 0x5f1   : > { %p2925_p12 = pnand %p2924_p11, %p2918_p4 }
 0x5f3   : > { %2928 = shalt.err (!%p2925_p12)
}
 0x5f4   : > { %s3018_s9 = smov 128   ;;  %s3019_s10 = smov 8  }
 0x5f5   : > { %2708 = dma.vmem_to_hbm [thread:$0]  (%p3122_p6), %s3802_s22, 2048, %s3807_s19, %s3811_s30, %s3018_s9, %s3018_s9, %s3019_s10  }
 0x5f6 PF: > { %s3907_s27 = sld [smem:[#allocation15_spill]]  ;;  %s3908_s18 = sld [smem:[#allocation10_spill]] }
 0x5fc   : > { %p2714_p13 = scmp.ge.s32.totalorder %s3907_s27, 2  ;;  %s2071_s12 = sand.u32 1, %s3908_s18  }
 0x5fd   : > { %s2072_s28 = scalar_lea.sflag [#allocation8], %s2071_s12 }
 0x5fe   : > { %p2711_p0 = pnand %p2714_p13, %p3129_p7 }
 0x600   : > { %2970 = dma.done.wait (!%p2711_p0), %s2072_s28, 2048  }
 0x601   : > { %2972 = vsyncadd (!%p2711_p0), %s2072_s28, 4294965248  ;;  %s20_s10 = sadd.s32 1, %s3907_s27   ;;  %s3910_s21 = sld [smem:[#allocation11_spill]] }
 0x602   : > { %p17_p1 = scmp.ge.s32.totalorder %s20_s10, 10   ;;  %s3911_s26 = sld [smem:[#allocation20_spill]] }
 0x603   : > { %s3912_s27 = sld [smem:[#allocation12_spill]]  ;;  %s3913_s28 = sld [smem:[#allocation13_spill]] }
 0x604   : > { %s3914_s29 = sld [smem:[#allocation14_spill]]  ;;  %s3915_s30 = sld [smem:[#allocation16_spill]] }
 0x605   : > { %s3916_s8 = sld [smem:[#allocation17_spill]]  ;;  %s3917_s9 = sld [smem:[#allocation19_spill]] }
 0x606   : > { %s3918_s24 = smov %s2979_s25  ;;  %19 = sbr.rel (!%p17_p1) target bundleno = 8 (0x8), region = 103 }
 0x607   : > { %s3919_s25 = smov %s3910_s21 }
 0x60d   :  { %2077 = vsyncpa [#allocation8], 1 }
 0x60e   :  { %2079 = vsyncpa [#allocation8 + $0x1], 1 }

</bundles_post_ra>
